<compile_context>
chip_gen: v7x
topology: tpu7x:2x2x1
jax: 0.10.0
libtpu: 0.0.40
codegen_flags: <defaults>
</compile_context>

<pallas_src>
import functools

import jax
import jax.numpy as jnp
from jax.experimental import pallas as pl
from jax.experimental.pallas import tpu as pltpu


_TARGET_CHUNK_ROWS = 256      # aim for TC*Bs rows per hoisted projection matmul
_MAX_TIME_CHUNK = 64
_MXU_DTYPE = jnp.bfloat16     # MXU operand dtype (accumulation is f32)


def _round_up(v, m):
    return ((v + m - 1) // m) * m


def _pick_time_chunk(T, Bs):
    """Largest time chunk <= target that divides T (avoids dead tail steps)."""
    target = max(1, min(_MAX_TIME_CHUNK, _TARGET_CHUNK_ROWS // Bs))
    if T <= target:
        return T
    best = 1
    for d in range(1, target + 1):
        if T % d == 0:
            best = d
    if best >= max(8, target // 2):
        return best
    # TODO(synk): specialize the final (shorter) chunk instead of padding it.
    return target


def _invariant_spec(shape, index_map):
    """BlockSpec for a grid-invariant operand: single-buffered (fetched once)."""
    try:
        return pl.BlockSpec(shape, index_map, pipeline_mode=pl.Buffered(1))
    except (TypeError, AttributeError, ValueError):
        # Older Pallas without pipeline_mode: fall back to default buffering.
        return pl.BlockSpec(shape, index_map)


def _vmem_limit_bytes(Fp, Hp, Op, L, Lm1, TC, Bs):
    wbytes = jnp.dtype(_MXU_DTYPE).itemsize
    weights = (Fp * Hp + (L + Lm1) * Hp * Hp + Hp * Op) * wbytes   # Buffered(1)
    biases = (Hp + Lm1 * Hp + Op) * 4
    io = 2 * (TC * Bs * Fp) * 4 + 2 * (Bs * Op) * 4                # x / out (x2)
    scratch = (L * Bs * Hp + 2 * TC * Bs * Hp) * 4                 # h + act x2
    total = weights + biases + io + scratch
    # x2 headroom covers the no-pipeline_mode fallback + Mosaic internals;
    # clamp to the smallest physical VMEM across targets (v7x: 64 MiB).
    return int(min(max(total * 2 + (4 << 20), 16 << 20), 64 << 20))


# --------------------------- fused forward kernel --------------------------- #
def _fused_rnn_kernel(x_ref, w_ih0_ref, b0_ref, w_ih_ref, b_ref, w_hh_ref,
                      fc_w_ref, fc_b_ref, out_ref, h_ref, act_a, act_b,
                      *, n_layers, time_chunk, batch_tile, last_chunk,
                      last_local):
    """One (batch-shard, time-chunk) tile of the multi-layer RNN + fused FC.

      x_ref    : (TC, Bs, Fp) f32  time-major chunk of layer-0 input
      w_ih0_ref: (Fp, Hp)  bf16    layer-0 W_ih^T
      b0_ref   : (1, Hp)   f32     layer-0 b_ih + b_hh
      w_ih_ref : (max(L-1,1), Hp, Hp) bf16   inner-layer W_ih^T
      b_ref    : (max(L-1,1), 1, Hp)  f32    inner-layer combined biases
      w_hh_ref : (L, Hp, Hp) bf16  W_hh^T per layer
      fc_w_ref : (Hp, Op)  bf16    fc.weight^T
      fc_b_ref : (1, Op)   f32
      out_ref  : (Bs, Op)  f32     written once, at global step T-1
      h_ref    : (L, Bs, Hp) f32 scratch — carried hidden state per layer
      act_a/b  : (TC*Bs, Hp) f32 scratch — ping-pong projections/activations
    """
    chunk = pl.program_id(1)          # time-chunk index ("arbitrary" axis)
    TC, Bs = time_chunk, batch_tile
    mxu_dt = w_hh_ref.dtype           # bf16 operands, f32 accumulate

    @pl.when(chunk == 0)
    def _init():
        h_ref[...] = jnp.zeros_like(h_ref)

    def capture_output(h_last):
        # Fused final Linear, only at the chunk containing global step T-1.
        @pl.when(chunk == last_chunk)
        def _():
            out_ref[...] = (
                jnp.dot(h_last.astype(mxu_dt), fc_w_ref[...],
                        preferred_element_type=jnp.float32)
                + fc_b_ref[...]
            ).astype(out_ref.dtype)

    def run_layer(layer_idx, w_hh, act, is_last):
        # `act` holds this layer's hoisted input projection (incl. bias) for
        # the whole chunk; run the sequential recurrence over it.
        # TODO(synk): layer-wavefront interleaving to hide MXU/EUP latency.
        h = h_ref[layer_idx]
        for t in range(TC):
            rows = pl.ds(t * Bs, Bs)
            pre = act[rows, :] + jnp.dot(h.astype(mxu_dt), w_hh,
                                         preferred_element_type=jnp.float32)
            h = jnp.tanh(pre)
            if not is_last:
                act[rows, :] = h              # becomes the next layer's input
            elif t == last_local:
                capture_output(h)             # fused FC at global step T-1
        h_ref[layer_idx] = h

    # ---- Layer 0: chunk-wide input projection in ONE MXU matmul ----
    x = x_ref[...].reshape(TC * Bs, x_ref.shape[-1]).astype(mxu_dt)
    act_a[...] = (
        jnp.dot(x, w_ih0_ref[...], preferred_element_type=jnp.float32)
        + b0_ref[...]
    )
    run_layer(0, w_hh_ref[0], act_a, is_last=(n_layers == 1))

    # ---- Layers 1..L-1: ping-pong act buffers (no aliased read/write dot) ----
    bufs = (act_a, act_b)
    for l in range(1, n_layers):
        src, dst = bufs[(l - 1) % 2], bufs[l % 2]
        dst[...] = (
            jnp.dot(src[...].astype(mxu_dt), w_ih_ref[l - 1],
                    preferred_element_type=jnp.float32)
            + b_ref[l - 1]
        )
        run_layer(l, w_hh_ref[l], dst, is_last=(l == n_layers - 1))


# ---------------------- one-time weight preprocessing ----------------------- #
def prepare_simple_rnn_params(params):
    """Pad / transpose / cast all weights once (hoisted out of the forward)."""
    layers = params["layers"]
    L = len(layers)
    H = layers[0]["w_hh"].shape[0]
    F = layers[0]["w_ih"].shape[1]
    O = params["fc_w"].shape[0]

    Hp = _round_up(H, 128)
    Fp = _round_up(F, 16)      # only 16-align the contraction dim (not 128)
    Op = _round_up(O, 128)
    Lm1 = max(L - 1, 1)
    f32, wdt = jnp.float32, _MXU_DTYPE

    def pad2(a, shape, dt):
        out = jnp.zeros(shape, f32)
        return out.at[: a.shape[0], : a.shape[1]].set(a.astype(f32)).astype(dt)

    w_ih0 = pad2(layers[0]["w_ih"].T, (Fp, Hp), wdt)
    b0 = jnp.zeros((1, Hp), f32).at[0, :H].set(
        layers[0]["b_ih"] + layers[0]["b_hh"])
    w_hh = jnp.stack([pad2(lp["w_hh"].T, (Hp, Hp), wdt) for lp in layers])
    if L > 1:
        w_ih_rest = jnp.stack(
            [pad2(layers[l]["w_ih"].T, (Hp, Hp), wdt) for l in range(1, L)])
        b_rest = jnp.stack([
            jnp.zeros((1, Hp), f32).at[0, :H].set(
                layers[l]["b_ih"] + layers[l]["b_hh"]) for l in range(1, L)])
    else:  # dummy (never read) to keep arrays non-empty
        w_ih_rest = jnp.zeros((Lm1, Hp, Hp), wdt)
        b_rest = jnp.zeros((Lm1, 1, Hp), f32)
    fc_w = pad2(params["fc_w"].T, (Hp, Op), wdt)
    fc_b = jnp.zeros((1, Op), f32).at[0, :O].set(params["fc_b"])

    weights = dict(w_ih0=w_ih0, b0=b0, w_ih_rest=w_ih_rest, b_rest=b_rest,
                   w_hh=w_hh, fc_w=fc_w, fc_b=fc_b)
    return weights, O


# -------------------------------- wrapper ----------------------------------- #
@functools.partial(jax.jit, static_argnums=(2,))
def simple_rnn_forward(x, weights, n_output):
    """x: (B, T, F) batch-first. weights: from prepare_simple_rnn_params."""
    B, T, F = x.shape
    L = weights["w_hh"].shape[0]
    Lm1 = weights["w_ih_rest"].shape[0]
    Hp = weights["w_hh"].shape[-1]
    Fp = weights["w_ih0"].shape[0]
    Op = weights["fc_w"].shape[-1]
    O = n_output
    f32 = jnp.float32

    Bp = _round_up(B, 8)                       # sublane-dense batch
    # Shard batch over the two v7x TensorCores when it is big enough
    # (each shard must stay a multiple of 8 sublanes). 1 shard on v5e/v6e.
    n_bshards = 2 if (Bp >= 16 and Bp % 16 == 0) else 1
    Bs = Bp // n_bshards
    TC = _pick_time_chunk(T, Bs)
    num_chunks = pl.cdiv(T, TC)
    Tp = num_chunks * TC

    # Time-major, batch-padded input (feature dim padded only to 16, not 128).
    xt = jnp.transpose(x, (1, 0, 2)).astype(f32)                    # (T, B, F)
    x_p = jnp.zeros((Tp, Bp, Fp), f32).at[:T, :B, :F].set(xt)

    kernel = functools.partial(
        _fused_rnn_kernel,
        n_layers=L, time_chunk=TC, batch_tile=Bs,
        last_chunk=(T - 1) // TC, last_local=(T - 1) % TC)

    out_p = pl.pallas_call(
        kernel,
        out_shape=jax.ShapeDtypeStruct((Bp, Op), f32),
        grid_spec=pltpu.PrefetchScalarGridSpec(
            num_scalar_prefetch=0,
            grid=(n_bshards, num_chunks),
            in_specs=[
                pl.BlockSpec((TC, Bs, Fp), lambda b, c: (c, b, 0)),     # x
                _invariant_spec((Fp, Hp), lambda b, c: (0, 0)),         # W_ih0^T
                _invariant_spec((1, Hp), lambda b, c: (0, 0)),          # b0
                _invariant_spec((Lm1, Hp, Hp), lambda b, c: (0, 0, 0)), # W_ih^T
                _invariant_spec((Lm1, 1, Hp), lambda b, c: (0, 0, 0)),  # b 1..
                _invariant_spec((L, Hp, Hp), lambda b, c: (0, 0, 0)),   # W_hh^T
                _invariant_spec((Hp, Op), lambda b, c: (0, 0)),         # fc_w^T
                _invariant_spec((1, Op), lambda b, c: (0, 0)),          # fc_b
            ],
            out_specs=pl.BlockSpec((Bs, Op), lambda b, c: (b, 0)),
            scratch_shapes=[
                pltpu.VMEM((L, Bs, Hp), f32),      # carried hidden states
                pltpu.VMEM((TC * Bs, Hp), f32),    # act ping
                pltpu.VMEM((TC * Bs, Hp), f32),    # act pong
            ],
        ),
        compiler_params=pltpu.CompilerParams(
            dimension_semantics=("parallel", "arbitrary"),
            vmem_limit_bytes=_vmem_limit_bytes(Fp, Hp, Op, L, Lm1, TC, Bs),
        ),
    )(x_p, weights["w_ih0"], weights["b0"], weights["w_ih_rest"],
      weights["b_rest"], weights["w_hh"], weights["fc_w"], weights["fc_b"])

    return out_p[:B, :O]


# ------------------------------ params init --------------------------------- #
def init_simple_rnn_params(key, n_input, n_hidden, n_layers, n_output):
    """Deterministic init mimicking PyTorch's U(-1/sqrt(H), 1/sqrt(H))."""
    params = {"layers": []}
    k = 1.0 / jnp.sqrt(jnp.float32(n_hidden))
    for layer in range(n_layers):
        in_dim = n_input if layer == 0 else n_hidden
        key, k1, k2, k3, k4 = jax.random.split(key, 5)
        params["layers"].append({
            "w_ih": jax.random.uniform(k1, (n_hidden, in_dim), jnp.float32, -k, k),
            "w_hh": jax.random.uniform(k2, (n_hidden, n_hidden), jnp.float32, -k, k),
            "b_ih": jax.random.uniform(k3, (n_hidden,), jnp.float32, -k, k),
            "b_hh": jax.random.uniform(k4, (n_hidden,), jnp.float32, -k, k),
        })
    key, k1, k2 = jax.random.split(key, 3)
    kf = 1.0 / jnp.sqrt(jnp.float32(n_hidden))
    params["fc_w"] = jax.random.uniform(k1, (n_output, n_hidden), jnp.float32, -kf, kf)
    params["fc_b"] = jax.random.uniform(k2, (n_output,), jnp.float32, -kf, kf)
    return params


# --------------------------- pure-JAX reference ------------------------------ #
def _ref_forward(x, params):
    B, T, _ = x.shape
    hp = jax.lax.Precision.HIGHEST
    seq = x.astype(jnp.float32)
    for lp in params["layers"]:
        H = lp["w_hh"].shape[0]
        h = jnp.zeros((B, H), jnp.float32)
        outs = []
        for t in range(T):
            h = jnp.tanh(jnp.dot(seq[:, t], lp["w_ih"].T, precision=hp) + lp["b_ih"]
                         + jnp.dot(h, lp["w_hh"].T, precision=hp) + lp["b_hh"])
            outs.append(h)
        seq = jnp.stack(outs, axis=1)
    return jnp.dot(seq[:, -1], params["fc_w"].T, precision=hp) + params["fc_b"]


if __name__ == "__main__":
    # Small shapes consistent with the module's forward (batch_first x: B,T,F).
    B, T = 2, 8
    n_input, n_hidden, n_layers, n_output = 4, 32, 2, 8

    key = jax.random.PRNGKey(0)
    key, kx, kp = jax.random.split(key, 3)
    x = jax.random.normal(kx, (B, T, n_input), jnp.float32)
    params = init_simple_rnn_params(kp, n_input, n_hidden, n_layers, n_output)

    weights, n_out = prepare_simple_rnn_params(params)
    out = jax.block_until_ready(simple_rnn_forward(x, weights, n_out))

    ref = _ref_forward(x, params)
    assert out.shape == (B, n_output), out.shape
    # bf16 MXU operands (f32 accumulation) vs. an f32 HIGHEST-precision
    # reference: use a mixed-precision tolerance.
    assert jnp.allclose(out, ref, atol=3e-2, rtol=3e-2), (out, ref)

    print("KERNEL_OK")
</pallas_src>

<mosaic_0001>
module attributes {stable_mosaic.version = 11 : i64} {
  func.func @_fused_rnn_kernel(%arg0: i32, %arg1: i32, %arg2: memref<8x8x16xf32, #tpu.memory_space<vmem>>, %arg3: memref<16x128xbf16, #tpu.memory_space<vmem>>, %arg4: memref<1x128xf32, #tpu.memory_space<vmem>>, %arg5: memref<1x128x128xbf16, #tpu.memory_space<vmem>>, %arg6: memref<1x1x128xf32, #tpu.memory_space<vmem>>, %arg7: memref<2x128x128xbf16, #tpu.memory_space<vmem>>, %arg8: memref<128x128xbf16, #tpu.memory_space<vmem>>, %arg9: memref<1x128xf32, #tpu.memory_space<vmem>>, %arg10: memref<8x128xf32, #tpu.memory_space<vmem>>, %arg11: memref<2x8x128xf32, #tpu.memory_space<vmem>>, %arg12: memref<64x128xf32, #tpu.memory_space<vmem>>, %arg13: memref<64x128xf32, #tpu.memory_space<vmem>>) attributes {dimension_semantics = [#tpu.dimension_semantics<parallel>, #tpu.dimension_semantics<arbitrary>], iteration_bounds = array<i64: 1, 1>, scalar_prefetch = 0 : i64, scratch_operands = 3 : i64, tpu.core_type = #tpu.core_type<tc>, window_params = [{transform_indices = @transform_0, window_bounds = array<i64: 8, 8, 16>}, {pipeline_mode = #tpu.pipeline_mode<synchronous>, transform_indices = @transform_1, window_bounds = array<i64: 16, 128>}, {pipeline_mode = #tpu.pipeline_mode<synchronous>, transform_indices = @transform_2, window_bounds = array<i64: 1, 128>}, {pipeline_mode = #tpu.pipeline_mode<synchronous>, transform_indices = @transform_3, window_bounds = array<i64: 1, 128, 128>}, {pipeline_mode = #tpu.pipeline_mode<synchronous>, transform_indices = @transform_4, window_bounds = array<i64: 1, 1, 128>}, {pipeline_mode = #tpu.pipeline_mode<synchronous>, transform_indices = @transform_5, window_bounds = array<i64: 2, 128, 128>}, {pipeline_mode = #tpu.pipeline_mode<synchronous>, transform_indices = @transform_6, window_bounds = array<i64: 128, 128>}, {pipeline_mode = #tpu.pipeline_mode<synchronous>, transform_indices = @transform_7, window_bounds = array<i64: 1, 128>}, {transform_indices = @transform_8, window_bounds = array<i64: 8, 128>}]} {
    %c0_i32 = arith.constant 0 : i32
    %0 = arith.cmpi eq, %arg1, %c0_i32 : i32
    %1 = arith.extui %0 : i1 to i32
    %c0_i32_0 = arith.constant 0 : i32
    %2 = arith.cmpi ne, %1, %c0_i32_0 : i32
    scf.if %2 {
      %cst_96 = arith.constant 0.000000e+00 : f32
      %127 = vector.broadcast %cst_96 : f32 to vector<2x8x128xf32>
      %c0_97 = arith.constant 0 : index
      %c0_98 = arith.constant 0 : index
      %c0_99 = arith.constant 0 : index
      %128 = vector.load %arg11[%c0_97, %c0_98, %c0_99] : memref<2x8x128xf32, #tpu.memory_space<vmem>>, vector<2x8x128xf32>
      tpu.vector_store %arg11[%c0_97, %c0_98, %c0_99], %127 {strides = array<i32>} : memref<2x8x128xf32, #tpu.memory_space<vmem>>, vector<2x8x128xf32>,
    } else {
    }
    %c0 = arith.constant 0 : index
    %c0_1 = arith.constant 0 : index
    %c0_2 = arith.constant 0 : index
    %3 = vector.load %arg2[%c0, %c0_1, %c0_2] : memref<8x8x16xf32, #tpu.memory_space<vmem>>, vector<8x8x16xf32>
    %4 = vector.shape_cast %3 : vector<8x8x16xf32> to vector<64x16xf32>
    %5 = arith.truncf %4 : vector<64x16xf32> to vector<64x16xbf16>
    %c0_3 = arith.constant 0 : index
    %c0_4 = arith.constant 0 : index
    %6 = vector.load %arg3[%c0_3, %c0_4] : memref<16x128xbf16, #tpu.memory_space<vmem>>, vector<16x128xbf16>
    %cst = arith.constant dense<0.000000e+00> : vector<64x128xf32>
    %7 = tpu.matmul %5, %6, %cst {dimension_numbers = #tpu.dot_dimension_numbers<[1], [0], [0], [1], [0, 0, 1, 1], [], []>} : vector<64x16xbf16>, vector<16x128xbf16>, vector<64x128xf32> -> vector<64x128xf32>
    %c0_5 = arith.constant 0 : index
    %c0_6 = arith.constant 0 : index
    %8 = vector.load %arg4[%c0_5, %c0_6] : memref<1x128xf32, #tpu.memory_space<vmem>>, vector<1x128xf32>
    %9 = vector.broadcast %8 : vector<1x128xf32> to vector<64x128xf32>
    %10 = arith.addf %7, %9 : vector<64x128xf32>
    %c0_7 = arith.constant 0 : index
    %c0_8 = arith.constant 0 : index
    %11 = vector.load %arg12[%c0_7, %c0_8] : memref<64x128xf32, #tpu.memory_space<vmem>>, vector<64x128xf32>
    tpu.vector_store %arg12[%c0_7, %c0_8], %10 {strides = array<i32>} : memref<64x128xf32, #tpu.memory_space<vmem>>, vector<64x128xf32>,
    %c0_9 = arith.constant 0 : index
    %c0_10 = arith.constant 0 : index
    %c0_11 = arith.constant 0 : index
    %12 = vector.load %arg7[%c0_9, %c0_10, %c0_11] : memref<2x128x128xbf16, #tpu.memory_space<vmem>>, vector<1x128x128xbf16>
    %13 = vector.shape_cast %12 : vector<1x128x128xbf16> to vector<128x128xbf16>
    %c0_12 = arith.constant 0 : index
    %c0_13 = arith.constant 0 : index
    %c0_14 = arith.constant 0 : index
    %14 = vector.load %arg11[%c0_12, %c0_13, %c0_14] : memref<2x8x128xf32, #tpu.memory_space<vmem>>, vector<1x8x128xf32>
    %15 = vector.shape_cast %14 : vector<1x8x128xf32> to vector<8x128xf32>
    %c0_15 = arith.constant 0 : index
    %c0_16 = arith.constant 0 : index
    %16 = vector.load %arg12[%c0_15, %c0_16] : memref<64x128xf32, #tpu.memory_space<vmem>>, vector<8x128xf32>
    %17 = arith.truncf %15 : vector<8x128xf32> to vector<8x128xbf16>
    %cst_17 = arith.constant dense<0.000000e+00> : vector<8x128xf32>
    %18 = tpu.matmul %17, %13, %cst_17 {dimension_numbers = #tpu.dot_dimension_numbers<[1], [0], [0], [1], [0, 0, 1, 1], [], []>} : vector<8x128xbf16>, vector<128x128xbf16>, vector<8x128xf32> -> vector<8x128xf32>
    %19 = arith.addf %16, %18 : vector<8x128xf32>
    %20 = math.tanh %19 : vector<8x128xf32>
    %c0_18 = arith.constant 0 : index
    %c0_19 = arith.constant 0 : index
    %21 = vector.load %arg12[%c0_18, %c0_19] : memref<64x128xf32, #tpu.memory_space<vmem>>, vector<8x128xf32>
    tpu.vector_store %arg12[%c0_18, %c0_19], %20 {strides = array<i32>} : memref<64x128xf32, #tpu.memory_space<vmem>>, vector<8x128xf32>,
    %c8 = arith.constant 8 : index
    %c0_20 = arith.constant 0 : index
    %22 = vector.load %arg12[%c8, %c0_20] : memref<64x128xf32, #tpu.memory_space<vmem>>, vector<8x128xf32>
    %23 = arith.truncf %20 : vector<8x128xf32> to vector<8x128xbf16>
    %cst_21 = arith.constant dense<0.000000e+00> : vector<8x128xf32>
    %24 = tpu.matmul %23, %13, %cst_21 {dimension_numbers = #tpu.dot_dimension_numbers<[1], [0], [0], [1], [0, 0, 1, 1], [], []>} : vector<8x128xbf16>, vector<128x128xbf16>, vector<8x128xf32> -> vector<8x128xf32>
    %25 = arith.addf %22, %24 : vector<8x128xf32>
    %26 = math.tanh %25 : vector<8x128xf32>
    %c8_22 = arith.constant 8 : index
    %c0_23 = arith.constant 0 : index
    %27 = vector.load %arg12[%c8_22, %c0_23] : memref<64x128xf32, #tpu.memory_space<vmem>>, vector<8x128xf32>
    tpu.vector_store %arg12[%c8_22, %c0_23], %26 {strides = array<i32>} : memref<64x128xf32, #tpu.memory_space<vmem>>, vector<8x128xf32>,
    %c16 = arith.constant 16 : index
    %c0_24 = arith.constant 0 : index
    %28 = vector.load %arg12[%c16, %c0_24] : memref<64x128xf32, #tpu.memory_space<vmem>>, vector<8x128xf32>
    %29 = arith.truncf %26 : vector<8x128xf32> to vector<8x128xbf16>
    %cst_25 = arith.constant dense<0.000000e+00> : vector<8x128xf32>
    %30 = tpu.matmul %29, %13, %cst_25 {dimension_numbers = #tpu.dot_dimension_numbers<[1], [0], [0], [1], [0, 0, 1, 1], [], []>} : vector<8x128xbf16>, vector<128x128xbf16>, vector<8x128xf32> -> vector<8x128xf32>
    %31 = arith.addf %28, %30 : vector<8x128xf32>
    %32 = math.tanh %31 : vector<8x128xf32>
    %c16_26 = arith.constant 16 : index
    %c0_27 = arith.constant 0 : index
    %33 = vector.load %arg12[%c16_26, %c0_27] : memref<64x128xf32, #tpu.memory_space<vmem>>, vector<8x128xf32>
    tpu.vector_store %arg12[%c16_26, %c0_27], %32 {strides = array<i32>} : memref<64x128xf32, #tpu.memory_space<vmem>>, vector<8x128xf32>,
    %c24 = arith.constant 24 : index
    %c0_28 = arith.constant 0 : index
    %34 = vector.load %arg12[%c24, %c0_28] : memref<64x128xf32, #tpu.memory_space<vmem>>, vector<8x128xf32>
    %35 = arith.truncf %32 : vector<8x128xf32> to vector<8x128xbf16>
    %cst_29 = arith.constant dense<0.000000e+00> : vector<8x128xf32>
    %36 = tpu.matmul %35, %13, %cst_29 {dimension_numbers = #tpu.dot_dimension_numbers<[1], [0], [0], [1], [0, 0, 1, 1], [], []>} : vector<8x128xbf16>, vector<128x128xbf16>, vector<8x128xf32> -> vector<8x128xf32>
    %37 = arith.addf %34, %36 : vector<8x128xf32>
    %38 = math.tanh %37 : vector<8x128xf32>
    %c24_30 = arith.constant 24 : index
    %c0_31 = arith.constant 0 : index
    %39 = vector.load %arg12[%c24_30, %c0_31] : memref<64x128xf32, #tpu.memory_space<vmem>>, vector<8x128xf32>
    tpu.vector_store %arg12[%c24_30, %c0_31], %38 {strides = array<i32>} : memref<64x128xf32, #tpu.memory_space<vmem>>, vector<8x128xf32>,
    %c32 = arith.constant 32 : index
    %c0_32 = arith.constant 0 : index
    %40 = vector.load %arg12[%c32, %c0_32] : memref<64x128xf32, #tpu.memory_space<vmem>>, vector<8x128xf32>
    %41 = arith.truncf %38 : vector<8x128xf32> to vector<8x128xbf16>
    %cst_33 = arith.constant dense<0.000000e+00> : vector<8x128xf32>
    %42 = tpu.matmul %41, %13, %cst_33 {dimension_numbers = #tpu.dot_dimension_numbers<[1], [0], [0], [1], [0, 0, 1, 1], [], []>} : vector<8x128xbf16>, vector<128x128xbf16>, vector<8x128xf32> -> vector<8x128xf32>
    %43 = arith.addf %40, %42 : vector<8x128xf32>
    %44 = math.tanh %43 : vector<8x128xf32>
    %c32_34 = arith.constant 32 : index
    %c0_35 = arith.constant 0 : index
    %45 = vector.load %arg12[%c32_34, %c0_35] : memref<64x128xf32, #tpu.memory_space<vmem>>, vector<8x128xf32>
    tpu.vector_store %arg12[%c32_34, %c0_35], %44 {strides = array<i32>} : memref<64x128xf32, #tpu.memory_space<vmem>>, vector<8x128xf32>,
    %c40 = arith.constant 40 : index
    %c0_36 = arith.constant 0 : index
    %46 = vector.load %arg12[%c40, %c0_36] : memref<64x128xf32, #tpu.memory_space<vmem>>, vector<8x128xf32>
    %47 = arith.truncf %44 : vector<8x128xf32> to vector<8x128xbf16>
    %cst_37 = arith.constant dense<0.000000e+00> : vector<8x128xf32>
    %48 = tpu.matmul %47, %13, %cst_37 {dimension_numbers = #tpu.dot_dimension_numbers<[1], [0], [0], [1], [0, 0, 1, 1], [], []>} : vector<8x128xbf16>, vector<128x128xbf16>, vector<8x128xf32> -> vector<8x128xf32>
    %49 = arith.addf %46, %48 : vector<8x128xf32>
    %50 = math.tanh %49 : vector<8x128xf32>
    %c40_38 = arith.constant 40 : index
    %c0_39 = arith.constant 0 : index
    %51 = vector.load %arg12[%c40_38, %c0_39] : memref<64x128xf32, #tpu.memory_space<vmem>>, vector<8x128xf32>
    tpu.vector_store %arg12[%c40_38, %c0_39], %50 {strides = array<i32>} : memref<64x128xf32, #tpu.memory_space<vmem>>, vector<8x128xf32>,
    %c48 = arith.constant 48 : index
    %c0_40 = arith.constant 0 : index
    %52 = vector.load %arg12[%c48, %c0_40] : memref<64x128xf32, #tpu.memory_space<vmem>>, vector<8x128xf32>
    %53 = arith.truncf %50 : vector<8x128xf32> to vector<8x128xbf16>
    %cst_41 = arith.constant dense<0.000000e+00> : vector<8x128xf32>
    %54 = tpu.matmul %53, %13, %cst_41 {dimension_numbers = #tpu.dot_dimension_numbers<[1], [0], [0], [1], [0, 0, 1, 1], [], []>} : vector<8x128xbf16>, vector<128x128xbf16>, vector<8x128xf32> -> vector<8x128xf32>
    %55 = arith.addf %52, %54 : vector<8x128xf32>
    %56 = math.tanh %55 : vector<8x128xf32>
    %c48_42 = arith.constant 48 : index
    %c0_43 = arith.constant 0 : index
    %57 = vector.load %arg12[%c48_42, %c0_43] : memref<64x128xf32, #tpu.memory_space<vmem>>, vector<8x128xf32>
    tpu.vector_store %arg12[%c48_42, %c0_43], %56 {strides = array<i32>} : memref<64x128xf32, #tpu.memory_space<vmem>>, vector<8x128xf32>,
    %c56 = arith.constant 56 : index
    %c0_44 = arith.constant 0 : index
    %58 = vector.load %arg12[%c56, %c0_44] : memref<64x128xf32, #tpu.memory_space<vmem>>, vector<8x128xf32>
    %59 = arith.truncf %56 : vector<8x128xf32> to vector<8x128xbf16>
    %cst_45 = arith.constant dense<0.000000e+00> : vector<8x128xf32>
    %60 = tpu.matmul %59, %13, %cst_45 {dimension_numbers = #tpu.dot_dimension_numbers<[1], [0], [0], [1], [0, 0, 1, 1], [], []>} : vector<8x128xbf16>, vector<128x128xbf16>, vector<8x128xf32> -> vector<8x128xf32>
    %61 = arith.addf %58, %60 : vector<8x128xf32>
    %62 = math.tanh %61 : vector<8x128xf32>
    %c56_46 = arith.constant 56 : index
    %c0_47 = arith.constant 0 : index
    %63 = vector.load %arg12[%c56_46, %c0_47] : memref<64x128xf32, #tpu.memory_space<vmem>>, vector<8x128xf32>
    tpu.vector_store %arg12[%c56_46, %c0_47], %62 {strides = array<i32>} : memref<64x128xf32, #tpu.memory_space<vmem>>, vector<8x128xf32>,
    %c0_48 = arith.constant 0 : index
    %c0_49 = arith.constant 0 : index
    %c0_50 = arith.constant 0 : index
    %64 = vector.load %arg11[%c0_48, %c0_49, %c0_50] : memref<2x8x128xf32, #tpu.memory_space<vmem>>, vector<1x8x128xf32>
    %65 = vector.shape_cast %64 : vector<1x8x128xf32> to vector<8x128xf32>
    %66 = vector.shape_cast %62 : vector<8x128xf32> to vector<1x8x128xf32>
    tpu.vector_store %arg11[%c0_48, %c0_49, %c0_50], %66 {strides = array<i32>} : memref<2x8x128xf32, #tpu.memory_space<vmem>>, vector<1x8x128xf32>,
    %c0_51 = arith.constant 0 : index
    %c0_52 = arith.constant 0 : index
    %67 = vector.load %arg12[%c0_51, %c0_52] : memref<64x128xf32, #tpu.memory_space<vmem>>, vector<64x128xf32>
    %68 = arith.truncf %67 : vector<64x128xf32> to vector<64x128xbf16>
    %c0_53 = arith.constant 0 : index
    %c0_54 = arith.constant 0 : index
    %c0_55 = arith.constant 0 : index
    %69 = vector.load %arg5[%c0_53, %c0_54, %c0_55] : memref<1x128x128xbf16, #tpu.memory_space<vmem>>, vector<1x128x128xbf16>
    %70 = vector.shape_cast %69 : vector<1x128x128xbf16> to vector<128x128xbf16>
    %cst_56 = arith.constant dense<0.000000e+00> : vector<64x128xf32>
    %71 = tpu.matmul %68, %70, %cst_56 {dimension_numbers = #tpu.dot_dimension_numbers<[1], [0], [0], [1], [0, 0, 1, 1], [], []>} : vector<64x128xbf16>, vector<128x128xbf16>, vector<64x128xf32> -> vector<64x128xf32>
    %c0_57 = arith.constant 0 : index
    %c0_58 = arith.constant 0 : index
    %c0_59 = arith.constant 0 : index
    %72 = vector.load %arg6[%c0_57, %c0_58, %c0_59] : memref<1x1x128xf32, #tpu.memory_space<vmem>>, vector<1x1x128xf32>
    %73 = vector.shape_cast %72 : vector<1x1x128xf32> to vector<1x128xf32>
    %74 = vector.broadcast %73 : vector<1x128xf32> to vector<64x128xf32>
    %75 = arith.addf %71, %74 : vector<64x128xf32>
    %c0_60 = arith.constant 0 : index
    %c0_61 = arith.constant 0 : index
    %76 = vector.load %arg13[%c0_60, %c0_61] : memref<64x128xf32, #tpu.memory_space<vmem>>, vector<64x128xf32>
    tpu.vector_store %arg13[%c0_60, %c0_61], %75 {strides = array<i32>} : memref<64x128xf32, #tpu.memory_space<vmem>>, vector<64x128xf32>,
    %c1 = arith.constant 1 : index
    %c0_62 = arith.constant 0 : index
    %c0_63 = arith.constant 0 : index
    %77 = vector.load %arg7[%c1, %c0_62, %c0_63] : memref<2x128x128xbf16, #tpu.memory_space<vmem>>, vector<1x128x128xbf16>
    %78 = vector.shape_cast %77 : vector<1x128x128xbf16> to vector<128x128xbf16>
    %c1_64 = arith.constant 1 : index
    %c0_65 = arith.constant 0 : index
    %c0_66 = arith.constant 0 : index
    %79 = vector.load %arg11[%c1_64, %c0_65, %c0_66] : memref<2x8x128xf32, #tpu.memory_space<vmem>>, vector<1x8x128xf32>
    %80 = vector.shape_cast %79 : vector<1x8x128xf32> to vector<8x128xf32>
    %c0_67 = arith.constant 0 : index
    %c0_68 = arith.constant 0 : index
    %81 = vector.load %arg13[%c0_67, %c0_68] : memref<64x128xf32, #tpu.memory_space<vmem>>, vector<8x128xf32>
    %82 = arith.truncf %80 : vector<8x128xf32> to vector<8x128xbf16>
    %cst_69 = arith.constant dense<0.000000e+00> : vector<8x128xf32>
    %83 = tpu.matmul %82, %78, %cst_69 {dimension_numbers = #tpu.dot_dimension_numbers<[1], [0], [0], [1], [0, 0, 1, 1], [], []>} : vector<8x128xbf16>, vector<128x128xbf16>, vector<8x128xf32> -> vector<8x128xf32>
    %84 = arith.addf %81, %83 : vector<8x128xf32>
    %85 = math.tanh %84 : vector<8x128xf32>
    %c8_70 = arith.constant 8 : index
    %c0_71 = arith.constant 0 : index
    %86 = vector.load %arg13[%c8_70, %c0_71] : memref<64x128xf32, #tpu.memory_space<vmem>>, vector<8x128xf32>
    %87 = arith.truncf %85 : vector<8x128xf32> to vector<8x128xbf16>
    %cst_72 = arith.constant dense<0.000000e+00> : vector<8x128xf32>
    %88 = tpu.matmul %87, %78, %cst_72 {dimension_numbers = #tpu.dot_dimension_numbers<[1], [0], [0], [1], [0, 0, 1, 1], [], []>} : vector<8x128xbf16>, vector<128x128xbf16>, vector<8x128xf32> -> vector<8x128xf32>
    %89 = arith.addf %86, %88 : vector<8x128xf32>
    %90 = math.tanh %89 : vector<8x128xf32>
    %c16_73 = arith.constant 16 : index
    %c0_74 = arith.constant 0 : index
    %91 = vector.load %arg13[%c16_73, %c0_74] : memref<64x128xf32, #tpu.memory_space<vmem>>, vector<8x128xf32>
    %92 = arith.truncf %90 : vector<8x128xf32> to vector<8x128xbf16>
    %cst_75 = arith.constant dense<0.000000e+00> : vector<8x128xf32>
    %93 = tpu.matmul %92, %78, %cst_75 {dimension_numbers = #tpu.dot_dimension_numbers<[1], [0], [0], [1], [0, 0, 1, 1], [], []>} : vector<8x128xbf16>, vector<128x128xbf16>, vector<8x128xf32> -> vector<8x128xf32>
    %94 = arith.addf %91, %93 : vector<8x128xf32>
    %95 = math.tanh %94 : vector<8x128xf32>
    %c24_76 = arith.constant 24 : index
    %c0_77 = arith.constant 0 : index
    %96 = vector.load %arg13[%c24_76, %c0_77] : memref<64x128xf32, #tpu.memory_space<vmem>>, vector<8x128xf32>
    %97 = arith.truncf %95 : vector<8x128xf32> to vector<8x128xbf16>
    %cst_78 = arith.constant dense<0.000000e+00> : vector<8x128xf32>
    %98 = tpu.matmul %97, %78, %cst_78 {dimension_numbers = #tpu.dot_dimension_numbers<[1], [0], [0], [1], [0, 0, 1, 1], [], []>} : vector<8x128xbf16>, vector<128x128xbf16>, vector<8x128xf32> -> vector<8x128xf32>
    %99 = arith.addf %96, %98 : vector<8x128xf32>
    %100 = math.tanh %99 : vector<8x128xf32>
    %c32_79 = arith.constant 32 : index
    %c0_80 = arith.constant 0 : index
    %101 = vector.load %arg13[%c32_79, %c0_80] : memref<64x128xf32, #tpu.memory_space<vmem>>, vector<8x128xf32>
    %102 = arith.truncf %100 : vector<8x128xf32> to vector<8x128xbf16>
    %cst_81 = arith.constant dense<0.000000e+00> : vector<8x128xf32>
    %103 = tpu.matmul %102, %78, %cst_81 {dimension_numbers = #tpu.dot_dimension_numbers<[1], [0], [0], [1], [0, 0, 1, 1], [], []>} : vector<8x128xbf16>, vector<128x128xbf16>, vector<8x128xf32> -> vector<8x128xf32>
    %104 = arith.addf %101, %103 : vector<8x128xf32>
    %105 = math.tanh %104 : vector<8x128xf32>
    %c40_82 = arith.constant 40 : index
    %c0_83 = arith.constant 0 : index
    %106 = vector.load %arg13[%c40_82, %c0_83] : memref<64x128xf32, #tpu.memory_space<vmem>>, vector<8x128xf32>
    %107 = arith.truncf %105 : vector<8x128xf32> to vector<8x128xbf16>
    %cst_84 = arith.constant dense<0.000000e+00> : vector<8x128xf32>
    %108 = tpu.matmul %107, %78, %cst_84 {dimension_numbers = #tpu.dot_dimension_numbers<[1], [0], [0], [1], [0, 0, 1, 1], [], []>} : vector<8x128xbf16>, vector<128x128xbf16>, vector<8x128xf32> -> vector<8x128xf32>
    %109 = arith.addf %106, %108 : vector<8x128xf32>
    %110 = math.tanh %109 : vector<8x128xf32>
    %c48_85 = arith.constant 48 : index
    %c0_86 = arith.constant 0 : index
    %111 = vector.load %arg13[%c48_85, %c0_86] : memref<64x128xf32, #tpu.memory_space<vmem>>, vector<8x128xf32>
    %112 = arith.truncf %110 : vector<8x128xf32> to vector<8x128xbf16>
    %cst_87 = arith.constant dense<0.000000e+00> : vector<8x128xf32>
    %113 = tpu.matmul %112, %78, %cst_87 {dimension_numbers = #tpu.dot_dimension_numbers<[1], [0], [0], [1], [0, 0, 1, 1], [], []>} : vector<8x128xbf16>, vector<128x128xbf16>, vector<8x128xf32> -> vector<8x128xf32>
    %114 = arith.addf %111, %113 : vector<8x128xf32>
    %115 = math.tanh %114 : vector<8x128xf32>
    %c56_88 = arith.constant 56 : index
    %c0_89 = arith.constant 0 : index
    %116 = vector.load %arg13[%c56_88, %c0_89] : memref<64x128xf32, #tpu.memory_space<vmem>>, vector<8x128xf32>
    %117 = arith.truncf %115 : vector<8x128xf32> to vector<8x128xbf16>
    %cst_90 = arith.constant dense<0.000000e+00> : vector<8x128xf32>
    %118 = tpu.matmul %117, %78, %cst_90 {dimension_numbers = #tpu.dot_dimension_numbers<[1], [0], [0], [1], [0, 0, 1, 1], [], []>} : vector<8x128xbf16>, vector<128x128xbf16>, vector<8x128xf32> -> vector<8x128xf32>
    %119 = arith.addf %116, %118 : vector<8x128xf32>
    %120 = math.tanh %119 : vector<8x128xf32>
    %c0_i32_91 = arith.constant 0 : i32
    %121 = arith.cmpi eq, %arg1, %c0_i32_91 : i32
    %122 = arith.extui %121 : i1 to i32
    %c0_i32_92 = arith.constant 0 : i32
    %123 = arith.cmpi ne, %122, %c0_i32_92 : i32
    scf.if %123 {
      %127 = arith.truncf %120 : vector<8x128xf32> to vector<8x128xbf16>
      %c0_96 = arith.constant 0 : index
      %c0_97 = arith.constant 0 : index
      %128 = vector.load %arg8[%c0_96, %c0_97] : memref<128x128xbf16, #tpu.memory_space<vmem>>, vector<128x128xbf16>
      %cst_98 = arith.constant dense<0.000000e+00> : vector<8x128xf32>
      %129 = tpu.matmul %127, %128, %cst_98 {dimension_numbers = #tpu.dot_dimension_numbers<[1], [0], [0], [1], [0, 0, 1, 1], [], []>} : vector<8x128xbf16>, vector<128x128xbf16>, vector<8x128xf32> -> vector<8x128xf32>
      %c0_99 = arith.constant 0 : index
      %c0_100 = arith.constant 0 : index
      %130 = vector.load %arg9[%c0_99, %c0_100] : memref<1x128xf32, #tpu.memory_space<vmem>>, vector<1x128xf32>
      %131 = vector.broadcast %130 : vector<1x128xf32> to vector<8x128xf32>
      %132 = arith.addf %129, %131 : vector<8x128xf32>
      %c0_101 = arith.constant 0 : index
      %c0_102 = arith.constant 0 : index
      %133 = vector.load %arg10[%c0_101, %c0_102] : memref<8x128xf32, #tpu.memory_space<vmem>>, vector<8x128xf32>
      tpu.vector_store %arg10[%c0_101, %c0_102], %132 {strides = array<i32>} : memref<8x128xf32, #tpu.memory_space<vmem>>, vector<8x128xf32>,
    } else {
    }
    %c1_93 = arith.constant 1 : index
    %c0_94 = arith.constant 0 : index
    %c0_95 = arith.constant 0 : index
    %124 = vector.load %arg11[%c1_93, %c0_94, %c0_95] : memref<2x8x128xf32, #tpu.memory_space<vmem>>, vector<1x8x128xf32>
    %125 = vector.shape_cast %124 : vector<1x8x128xf32> to vector<8x128xf32>
    %126 = vector.shape_cast %120 : vector<8x128xf32> to vector<1x8x128xf32>
    tpu.vector_store %arg11[%c1_93, %c0_94, %c0_95], %126 {strides = array<i32>} : memref<2x8x128xf32, #tpu.memory_space<vmem>>, vector<1x8x128xf32>,
    return
  }
  func.func @transform_0(%arg0: i32, %arg1: i32) -> (i32, i32, i32) {
    %c0_i32 = arith.constant 0 : i32
    %c0_i32_0 = arith.constant 0 : i32
    return %arg1, %arg0, %c0_i32 : i32, i32, i32
  }
  func.func @transform_1(%arg0: i32, %arg1: i32) -> (i32, i32) {
    %c0_i32 = arith.constant 0 : i32
    %c0_i32_0 = arith.constant 0 : i32
    %c0_i32_1 = arith.constant 0 : i32
    return %c0_i32, %c0_i32_0 : i32, i32
  }
  func.func @transform_2(%arg0: i32, %arg1: i32) -> (i32, i32) {
    %c0_i32 = arith.constant 0 : i32
    %c0_i32_0 = arith.constant 0 : i32
    %c0_i32_1 = arith.constant 0 : i32
    return %c0_i32, %c0_i32_0 : i32, i32
  }
  func.func @transform_3(%arg0: i32, %arg1: i32) -> (i32, i32, i32) {
    %c0_i32 = arith.constant 0 : i32
    %c0_i32_0 = arith.constant 0 : i32
    %c0_i32_1 = arith.constant 0 : i32
    %c0_i32_2 = arith.constant 0 : i32
    return %c0_i32, %c0_i32_0, %c0_i32_1 : i32, i32, i32
  }
  func.func @transform_4(%arg0: i32, %arg1: i32) -> (i32, i32, i32) {
    %c0_i32 = arith.constant 0 : i32
    %c0_i32_0 = arith.constant 0 : i32
    %c0_i32_1 = arith.constant 0 : i32
    %c0_i32_2 = arith.constant 0 : i32
    return %c0_i32, %c0_i32_0, %c0_i32_1 : i32, i32, i32
  }
  func.func @transform_5(%arg0: i32, %arg1: i32) -> (i32, i32, i32) {
    %c0_i32 = arith.constant 0 : i32
    %c0_i32_0 = arith.constant 0 : i32
    %c0_i32_1 = arith.constant 0 : i32
    %c0_i32_2 = arith.constant 0 : i32
    return %c0_i32, %c0_i32_0, %c0_i32_1 : i32, i32, i32
  }
  func.func @transform_6(%arg0: i32, %arg1: i32) -> (i32, i32) {
    %c0_i32 = arith.constant 0 : i32
    %c0_i32_0 = arith.constant 0 : i32
    %c0_i32_1 = arith.constant 0 : i32
    return %c0_i32, %c0_i32_0 : i32, i32
  }
  func.func @transform_7(%arg0: i32, %arg1: i32) -> (i32, i32) {
    %c0_i32 = arith.constant 0 : i32
    %c0_i32_0 = arith.constant 0 : i32
    %c0_i32_1 = arith.constant 0 : i32
    return %c0_i32, %c0_i32_0 : i32, i32
  }
  func.func @transform_8(%arg0: i32, %arg1: i32) -> (i32, i32) {
    %c0_i32 = arith.constant 0 : i32
    %c0_i32_0 = arith.constant 0 : i32
    return %arg0, %c0_i32 : i32, i32
  }
}

</mosaic_0001>

<bundles_post_ra>
// kernel: simple_rnn_forward.1
= control target key start
LH: loop header
LB: loop body
LE: loop exit
PB: predicated region body
PF: predicated region fallthrough
CT: control target
= control target key end

     0   :  { %13 = vsyncpa [#allocation6], 0  ;;  %s2599_s0 = inlined_call_operand.vmem [shape: f32[8,8,16], index: 0, kind: input, shape index: {}]   ;;  %s2600_s1 = inlined_call_operand.vmem [shape: bf16[16,128], index: 1, kind: input, shape index: {}]   ;;  %s2601_s2 = inlined_call_operand.vmem [shape: f32[1,128], index: 2, kind: input, shape index: {}]   ;;  %s2602_s3 = inlined_call_operand.hbm [shape: bf16[1,128,128], index: 3, kind: input, shape index: {}]   ;;  %s2603_s4 = inlined_call_operand.vmem [shape: f32[1,1,128], index: 4, kind: input, shape index: {}]   ;;  %s2604_s5 = inlined_call_operand.vmem [shape: bf16[2,128,128], index: 5, kind: input, shape index: {}]   ;;  %s2605_s6 = inlined_call_operand.hbm [shape: bf16[128,128], index: 6, kind: input, shape index: {}]   ;;  %s2606_s7 = inlined_call_operand.vmem [shape: f32[1,128], index: 7, kind: input, shape index: {}]   ;;  %s2607_s8 = inlined_call_operand.vmem [shape: f32[8,128], index: 8, kind: output, shape index: {}]  }
   0x1   :  { %14 = vsyncpa [#allocation8], 0  ;;  %s2021_s27 = smov [#allocation5]   ;;  %s1973_s9 = scalar_lea.hbm %s2602_s3, 1024 }
   0x2   :  { %s26_s28 = sshll.u32 %s2021_s27, 4  ;;  %p1974_p0 = scmp.ne.s32.totalorder %s2602_s3, %s1973_s9  ;;  %s27_s28 = int_to_ptr.vmem [resolvable:$true] %s26_s28 }
   0x3   :  { %p1977_p1 = scmp.lt.u32.totalorder %s1973_s9, %s2602_s3 }
   0x5   :  { %p1979_p2 = pnand %p1977_p1, %p1974_p0 }
   0x7   :  { %1982 = shalt.err (!%p1979_p2)
}
   0x8   :  { %s1983_s14 = scalar_lea.vmem %s27_s28, 1024  ;;  %p1988_p4 = scmp.lt.s32.totalorder %s27_s28, %s27_s28 }
   0x9   :  { %p1984_p3 = scmp.ne.s32.totalorder %s27_s28, %s1983_s14  ;;  %p1989_p5 = scmp.lt.s32.totalorder %s1983_s14, %s1983_s14 }
   0xb   :  { %p1990_p6 = por %p1989_p5, %p1988_p4 }
   0xd   :  { %p1991_p7 = pnand %p1990_p6, %p1984_p3 }
   0xf   :  { %1994 = shalt.err (!%p1991_p7)
}
  0x10   :  { %s2022_s15 = smov 64   ;;  %s2023_s16 = smov 4  }
  0x11   :  { %32 = dma.hbm_to_vmem [thread:$0]  %s2602_s3, 1024, %s27_s28, [#allocation6], %s2022_s15, %s2022_s15, %s2023_s16  }
  0x12   :  { %s2024_s19 = smov [#allocation7]   ;;  %s1995_s23 = scalar_lea.hbm %s2605_s6, 1024 }
  0x13   :  { %s42_s20 = sshll.u32 %s2024_s19, 4  ;;  %p1996_p8 = scmp.ne.s32.totalorder %s2605_s6, %s1995_s23  ;;  %s43_s20 = int_to_ptr.vmem [resolvable:$true] %s42_s20 }
  0x14   :  { %p1999_p9 = scmp.lt.u32.totalorder %s1995_s23, %s2605_s6 }
  0x16   :  { %p2001_p10 = pnand %p1999_p9, %p1996_p8 }
  0x18   :  { %2004 = shalt.err (!%p2001_p10)
}
  0x19   :  { %s2005_s29 = scalar_lea.vmem %s43_s20, 1024  ;;  %p2010_p12 = scmp.lt.s32.totalorder %s43_s20, %s43_s20 }
  0x1a   :  { %p2006_p11 = scmp.ne.s32.totalorder %s43_s20, %s2005_s29  ;;  %p2011_p13 = scmp.lt.s32.totalorder %s2005_s29, %s2005_s29 }
  0x1c   :  { %p2012_p0 = por %p2011_p13, %p2010_p12 }
  0x1e   :  { %p2013_p1 = pnand %p2012_p0, %p2006_p11 }
  0x20   :  { %2016 = shalt.err (!%p2013_p1)
}
  0x21   :  { %48 = dma.hbm_to_vmem [thread:$0]  %s2605_s6, 1024, %s43_s20, [#allocation8], %s2022_s15, %s2022_s15, %s2023_s16  }
  0x22   :  { %2017 = dma.done.wait [#allocation6], 1024  }
  0x23   :  { %2018 = vsyncadd [#allocation6], 4294966272 }
  0x24   :  { %2019 = dma.done.wait [#allocation8], 1024  }
  0x25   :  { %2020 = vsyncadd [#allocation8], 4294966272  ;;  %v2025_v0 = vmov 0.0   ;;  %vm2026_vm0 = vmmov 0   ;;  %v2103_v1 = vld [vmem:[%s2604_s5] sm:$0xff]   ;;  %v2109_v2 = vld [vmem:[%s2604_s5 + $0x8] sm:$0xff]  }
  0x26   :  { %1537 = vmatprep.subr.bf16.mxu1 %v2025_v0  ;;  %1553 = vmatprep.mubr.msk.bf16.mxu1 %vm2026_vm0, %v2025_v0  ;;  %v2115_v3 = vld [vmem:[%s2604_s5 + $0x10] sm:$0xff]   ;;  %v1914_v4 = vld [vmem:[%s2600_s1] sm:$0xff]   ;;  %v65_v6 = vld [vmem:[%s2599_s0 + $0x8] sm:$0xff]  ;;  %vm91_vm1 = vcmask 130048   ;;  %v2027_v16 = vmov 0.0|0.0  }
  0x27   :  { %1538 = vmatpush3.bf16.msra.mxu1 %v2103_v1  ;;  %v64_v5 = vld [vmem:[%s2599_s0] sm:$0xff]  ;;  %1527 = vmatprep.subr.bf16.mxu0 %v1914_v4  ;;  %v66_v8 = vld [vmem:[%s2599_s0 + $0x10] sm:$0xff]  ;;  %v67_v9 = vld [vmem:[%s2599_s0 + $0x18] sm:$0xff] }
  0x28   :  { %1539 = vmatprep.subr.bf16.mxu1 %v2025_v0  ;;  %v72_v7 = vpack.c.bf16 %v65_v6, %v64_v5  ;;  %1528 = vmatpush3.bf16.msra.mxu0 %v1914_v4  ;;  %v2138_v10 = vld [vmem:[%s2604_s5 + $0x18] sm:$0xff]   ;;  %v73_v11 = vpack.c.bf16 %v67_v9, %v66_v8  ;;  %v2146_v12 = vld [vmem:[%s2604_s5 + $0x20] sm:$0xff]   ;;  %v2156_v13 = vld [vmem:[%s2604_s5 + $0x28] sm:$0xff]  }
  0x29   :  { %1557 = vmatprep.subr.bf16.mxu0 %v2025_v0  ;;  %v2165_v14 = vld [vmem:[%s2604_s5 + $0x30] sm:$0xff]   ;;  %v2176_v15 = vld [vmem:[%s2604_s5 + $0x38] sm:$0xff]   ;;  %v68_v17 = vld [vmem:[%s2599_s0 + $0x20] sm:$0xff] }
  0x2a   :  { %1529 = vmatprep.mubr.msk.bf16.mxu0 %vm91_vm1, %v72_v7  ;;  %v69_v18 = vld [vmem:[%s2599_s0 + $0x28] sm:$0xff]  ;;  %v70_v20 = vld [vmem:[%s2599_s0 + $0x30] sm:$0xff]  ;;  %v71_v21 = vld [vmem:[%s2599_s0 + $0x38] sm:$0xff] }
  0x2b   :  { %1540 = vmatpush3.bf16.msra.mxu1 %v2109_v2  ;;  %1530 = vmatmul.mubr.msk.bf16.vlgmr.msra.gmra.mrb[0].mxu0 %vm91_vm1, %v73_v11  ;;  %v74_v19 = vpack.c.bf16 %v69_v18, %v68_v17  ;;  %v75_v22 = vpack.c.bf16 %v71_v21, %v70_v20  ;;  %v2232_v27 = vld [vmem:[%s2601_s2] ss:$0 sm:$0xff] }
  0x2c   :  { %1541 = vmatprep.subr.bf16.mxu1 %v2025_v0  ;;  %1558 = vmatpush3.bf16.msra.mxu0 %v2103_v1 }
  0x2d   :  { %1559 = vmatprep.subr.bf16.mxu0 %v2025_v0  ;;  %1533 = vmatprep.mubr.msk.bf16.mxu0 %vm91_vm1, %v74_v19 }
  0x2f   :  { %1542 = vmatpush3.bf16.msra.mxu1 %v2115_v3 }
  0x30   :  { %1543 = vmatprep.subr.bf16.mxu1 %v2025_v0  ;;  %1560 = vmatpush3.bf16.msra.mxu0 %v2109_v2 }
  0x31   :  { %1561 = vmatprep.subr.bf16.mxu0 %v2025_v0 }
  0x33   :  { %1544 = vmatpush3.bf16.msra.mxu1 %v2138_v10  ;;  %1534 = vmatmul.mubr.msk.bf16.gmra.mrb[4].mxu0 %vm91_vm1, %v75_v22  ;;  %v1920_v22 = vld [vmem:[#allocation5 + $0x18] sm:$0xff]  }
  0x34   :  { %1545 = vmatprep.subr.bf16.mxu1 %v2025_v0  ;;  %1562 = vmatpush3.bf16.msra.mxu0 %v2115_v3 }
  0x35   :  { %1563 = vmatprep.subr.bf16.mxu0 %v2025_v0  ;;  %1573 = vmatprep.mubr.msk.bf16.mxu0 %vm2026_vm0, %v2025_v0 }
  0x37   :  { %1546 = vmatpush3.bf16.msra.mxu1 %v2146_v12 }
  0x38   :  { %1547 = vmatprep.subr.bf16.mxu1 %v2025_v0  ;;  %1564 = vmatpush3.bf16.msra.mxu0 %v2138_v10 }
  0x39   :  { %1565 = vmatprep.subr.bf16.mxu0 %v2025_v0 }
  0x3b   :  { %1548 = vmatpush3.bf16.msra.mxu1 %v2156_v13 }
  0x3c   :  { %1549 = vmatprep.subr.bf16.mxu1 %v2025_v0  ;;  %1566 = vmatpush3.bf16.msra.mxu0 %v2146_v12 }
  0x3d   :  { %1567 = vmatprep.subr.bf16.mxu0 %v2025_v0 }
  0x3f   :  { %1550 = vmatpush3.bf16.msra.mxu1 %v2165_v14 }
  0x40   :  { %1551 = vmatprep.subr.bf16.mxu1 %v2025_v0  ;;  %1568 = vmatpush3.bf16.msra.mxu0 %v2156_v13 }
  0x41   :  { %1569 = vmatprep.subr.bf16.mxu0 %v2025_v0 }
  0x43   :  { %1552 = vmatpush3.bf16.msra.mxu1 %v2176_v15 }
  0x44   :  { %1577 = vmatprep.subr.bf16.mxu1 %v2025_v0  ;;  %1570 = vmatpush3.bf16.msra.mxu0 %v2165_v14 }
  0x45   :  { %1571 = vmatprep.subr.bf16.mxu0 %v2025_v0 }
  0x46   :  { %1554 = vmatmul.mubr.bf16.vlgmr.msra.gmra.mrb[0].mxu1 %v2027_v16 }
  0x47   :  { %1578 = vmatpush3.bf16.msra.mxu1 %v2103_v1  ;;  %1593 = vmatprep.mubr.msk.bf16.mxu1 %vm2026_vm0, %v2025_v0 }
  0x48   :  { %1579 = vmatprep.subr.bf16.mxu1 %v2025_v0  ;;  %1572 = vmatpush3.bf16.msra.mxu0 %v2176_v15 }
  0x49   :  { %1597 = vmatprep.subr.bf16.mxu0 %v2025_v0 }
  0x4b   :  { %1580 = vmatpush3.bf16.msra.mxu1 %v2109_v2 }
  0x4c   :  { %1581 = vmatprep.subr.bf16.mxu1 %v2025_v0 }
  0x4f   :  { %1582 = vmatpush3.bf16.msra.mxu1 %v2115_v3 }
  0x50   :  { %1583 = vmatprep.subr.bf16.mxu1 %v2025_v0 }
  0x53   :  { %1584 = vmatpush3.bf16.msra.mxu1 %v2138_v10 }
  0x54   :  { %1585 = vmatprep.subr.bf16.mxu1 %v2025_v0 }
  0x57   :  { %1586 = vmatpush3.bf16.msra.mxu1 %v2146_v12 }
  0x58   :  { %1587 = vmatprep.subr.bf16.mxu1 %v2025_v0 }
  0x5b   :  { %1588 = vmatpush3.bf16.msra.mxu1 %v2156_v13 }
  0x5c   :  { %1589 = vmatprep.subr.bf16.mxu1 %v2025_v0 }
  0x5f   :  { %1590 = vmatpush3.bf16.msra.mxu1 %v2165_v14 }
  0x60   :  { %1591 = vmatprep.subr.bf16.mxu1 %v2025_v0 }
  0x63   :  { %1592 = vmatpush3.bf16.msra.mxu1 %v2176_v15 }
  0x64   :  { %1617 = vmatprep.subr.bf16.mxu1 %v2025_v0 }
  0xfe   :  { %v2225_v23 = vpop.f32.mrb[0].mxu0 }
  0xff   :  { %v138_v24 = vpop.f32.mrb[1].mxu0  ;;  %v147_v48 = vadd.f32 %v2225_v23, %v2232_v27  ;;  %v1921_v23 = vld [vmem:[#allocation5 + $0x20] sm:$0xff]  }
 0x100   :  { %v2227_v25 = vpop.f32.mrb[2].mxu0  ;;  %v139_v28 = vadd.f32 %v2232_v27, %v138_v24  ;;  %v1922_v24 = vld [vmem:[#allocation5 + $0x28] sm:$0xff]  }
 0x101   :  { %v141_v26 = vpop.f32.mrb[3].mxu0  ;;  %v150_v56 = vadd.f32 %v2227_v25, %v2232_v27  ;;  %v1923_v25 = vld [vmem:[#allocation5 + $0x30] sm:$0xff]  }
 0x102   :  { %v142_v40 = vadd.f32 %v2232_v27, %v141_v26  ;;  %v1924_v26 = vld [vmem:[#allocation5 + $0x38] sm:$0xff]  }
 0x106   :  { %v2257_v36 = vpop.f32.mrb[4].mxu0 }
 0x107   :  { %v2259_v37 = vpop.f32.mrb[5].mxu0 }
 0x108   :  { %v2261_v38 = vpop.f32.mrb[6].mxu0  ;;  %v155_v4 = vadd.f32 %v2232_v27, %v2259_v37  ;;  %v2407_v37 = vld [vmem:[%s2604_s5 + $0x70] sm:$0xff]  }
 0x109   :  { %v2263_v39 = vpop.f32.mrb[7].mxu0 }
 0x119   :  { %v278_v29 = vpop.f32.mrb[0].mxu1 }
 0x11a   :  { %v284_v30 = vadd.f32 %v278_v29, %v139_v28  ;;  %v1555_v31 = vpop.f32.mrb[1].mxu1 }
 0x11b   :  { %v281_v32 = vpop.f32.mrb[2].mxu1  ;;  %v2372_v31 = vld [vmem:[%s2604_s5 + $0x48] sm:$0xff]  }
 0x11c   :  { %1941 = vtanh.f32 %v284_v30  ;;  %v1556_v33 = vpop.f32.mrb[3].mxu1  ;;  %v2365_v30 = vld [vmem:[%s2604_s5 + $0x40] sm:$0xff]   ;;  %v2379_v32 = vld [vmem:[%s2604_s5 + $0x50] sm:$0xff]  }
 0x11d   :  { %v2386_v33 = vld [vmem:[%s2604_s5 + $0x58] sm:$0xff]  }
 0x126   :  { %v2235_v34 = vpop.eup %1941 }
 0x127   :  { %v288_v35 = vpack.c.bf16 %v2235_v34, %v2235_v34 }
 0x129   :  { %1574 = vmatmul.mubr.bf16.vlgmr.msra.gmra.mrb[8].mxu0 %v288_v35  ;;  %v2400_v35 = vld [vmem:[%s2604_s5 + $0x68] sm:$0xff]  }
 0x12a   :  { %1598 = vmatpush3.bf16.msra.mxu0 %v2103_v1  ;;  %1613 = vmatprep.mubr.msk.bf16.mxu0 %vm2026_vm0, %v2025_v0 }
 0x12b   :  { %1599 = vmatprep.subr.bf16.mxu0 %v2025_v0 }
 0x12e   :  { %1600 = vmatpush3.bf16.msra.mxu0 %v2109_v2 }
 0x12f   :  { %1601 = vmatprep.subr.bf16.mxu0 %v2025_v0 }
 0x132   :  { %1602 = vmatpush3.bf16.msra.mxu0 %v2115_v3 }
 0x133   :  { %1603 = vmatprep.subr.bf16.mxu0 %v2025_v0 }
 0x136   :  { %1604 = vmatpush3.bf16.msra.mxu0 %v2138_v10 }
 0x137   :  { %1605 = vmatprep.subr.bf16.mxu0 %v2025_v0 }
 0x13a   :  { %1606 = vmatpush3.bf16.msra.mxu0 %v2146_v12 }
 0x13b   :  { %1607 = vmatprep.subr.bf16.mxu0 %v2025_v0 }
 0x13e   :  { %1608 = vmatpush3.bf16.msra.mxu0 %v2156_v13 }
 0x13f   :  { %1609 = vmatprep.subr.bf16.mxu0 %v2025_v0 }
 0x142   :  { %1610 = vmatpush3.bf16.msra.mxu0 %v2165_v14 }
 0x143   :  { %1611 = vmatprep.subr.bf16.mxu0 %v2025_v0 }
 0x146   :  { %1612 = vmatpush3.bf16.msra.mxu0 %v2176_v15 }
 0x147   :  { %1637 = vmatprep.subr.bf16.mxu0 %v2025_v0 }
 0x1fc   :  { %v323_v41 = vpop.f32.mrb[8].mxu0 }
 0x1fd   :  { %v329_v42 = vadd.f32 %v323_v41, %v142_v40  ;;  %v1575_v43 = vpop.f32.mrb[9].mxu0  ;;  %v163_v40 = vadd.f32 %v2257_v36, %v2232_v27 }
 0x1fe   :  { %v326_v44 = vpop.f32.mrb[10].mxu0 }
 0x1ff   :  { %1943 = vtanh.f32 %v329_v42  ;;  %v1576_v45 = vpop.f32.mrb[11].mxu0 }
 0x209   :  { %v2266_v46 = vpop.eup %1943 }
 0x20a   :  { %v333_v47 = vpack.c.bf16 %v2266_v46, %v2266_v46  ;;  %v611_v21 = vpack.c.bf16 %v2266_v46, %v2235_v34  ;;  %v2393_v34 = vld [vmem:[%s2604_s5 + $0x60] sm:$0xff]  }
 0x20c   :  { %1594 = vmatmul.mubr.bf16.vlgmr.msra.gmra.mrb[4].mxu1 %v333_v47 }
 0x20d   :  { %1618 = vmatpush3.bf16.msra.mxu1 %v2103_v1  ;;  %1633 = vmatprep.mubr.msk.bf16.mxu1 %vm2026_vm0, %v2025_v0 }
 0x20e   :  { %1619 = vmatprep.subr.bf16.mxu1 %v2025_v0 }
 0x211   :  { %1620 = vmatpush3.bf16.msra.mxu1 %v2109_v2 }
 0x212   :  { %1621 = vmatprep.subr.bf16.mxu1 %v2025_v0 }
 0x215   :  { %1622 = vmatpush3.bf16.msra.mxu1 %v2115_v3 }
 0x216   :  { %1623 = vmatprep.subr.bf16.mxu1 %v2025_v0 }
 0x219   :  { %1624 = vmatpush3.bf16.msra.mxu1 %v2138_v10 }
 0x21a   :  { %1625 = vmatprep.subr.bf16.mxu1 %v2025_v0 }
 0x21d   :  { %1626 = vmatpush3.bf16.msra.mxu1 %v2146_v12 }
 0x21e   :  { %1627 = vmatprep.subr.bf16.mxu1 %v2025_v0 }
 0x221   :  { %1628 = vmatpush3.bf16.msra.mxu1 %v2156_v13 }
 0x222   :  { %1629 = vmatprep.subr.bf16.mxu1 %v2025_v0 }
 0x225   :  { %1630 = vmatpush3.bf16.msra.mxu1 %v2165_v14 }
 0x226   :  { %1631 = vmatprep.subr.bf16.mxu1 %v2025_v0 }
 0x229   :  { %1632 = vmatpush3.bf16.msra.mxu1 %v2176_v15 }
 0x22a   :  { %1657 = vmatprep.subr.bf16.mxu1 %v2025_v0 }
 0x2df   :  { %v368_v49 = vpop.f32.mrb[4].mxu1 }
 0x2e0   :  { %v374_v50 = vadd.f32 %v368_v49, %v147_v48  ;;  %v1595_v51 = vpop.f32.mrb[5].mxu1 }
 0x2e1   :  { %v371_v52 = vpop.f32.mrb[6].mxu1 }
 0x2e2   :  { %1945 = vtanh.f32 %v374_v50  ;;  %v1596_v53 = vpop.f32.mrb[7].mxu1 }
 0x2ec   :  { %v2290_v54 = vpop.eup %1945 }
 0x2ed   :  { %v378_v55 = vpack.c.bf16 %v2290_v54, %v2290_v54 }
 0x2ef   :  { %1614 = vmatmul.mubr.bf16.vlgmr.msra.gmra.mrb[12].mxu0 %v378_v55 }
 0x2f0   :  { %1638 = vmatpush3.bf16.msra.mxu0 %v2103_v1  ;;  %1653 = vmatprep.mubr.msk.bf16.mxu0 %vm2026_vm0, %v2025_v0 }
 0x2f1   :  { %1639 = vmatprep.subr.bf16.mxu0 %v2025_v0 }
 0x2f4   :  { %1640 = vmatpush3.bf16.msra.mxu0 %v2109_v2 }
 0x2f5   :  { %1641 = vmatprep.subr.bf16.mxu0 %v2025_v0 }
 0x2f8   :  { %1642 = vmatpush3.bf16.msra.mxu0 %v2115_v3 }
 0x2f9   :  { %1643 = vmatprep.subr.bf16.mxu0 %v2025_v0 }
 0x2fc   :  { %1644 = vmatpush3.bf16.msra.mxu0 %v2138_v10 }
 0x2fd   :  { %1645 = vmatprep.subr.bf16.mxu0 %v2025_v0 }
 0x300   :  { %1646 = vmatpush3.bf16.msra.mxu0 %v2146_v12 }
 0x301   :  { %1647 = vmatprep.subr.bf16.mxu0 %v2025_v0 }
 0x304   :  { %1648 = vmatpush3.bf16.msra.mxu0 %v2156_v13 }
 0x305   :  { %1649 = vmatprep.subr.bf16.mxu0 %v2025_v0 }
 0x308   :  { %1650 = vmatpush3.bf16.msra.mxu0 %v2165_v14 }
 0x309   :  { %1651 = vmatprep.subr.bf16.mxu0 %v2025_v0 }
 0x30c   :  { %1652 = vmatpush3.bf16.msra.mxu0 %v2176_v15 }
 0x30d   :  { %1677 = vmatprep.subr.bf16.mxu0 %v2025_v0 }
 0x3c2   :  { %v413_v57 = vpop.f32.mrb[12].mxu0 }
 0x3c3   :  { %v419_v58 = vadd.f32 %v413_v57, %v150_v56  ;;  %v1615_v59 = vpop.f32.mrb[13].mxu0 }
 0x3c4   :  { %v416_v60 = vpop.f32.mrb[14].mxu0 }
 0x3c5   :  { %1947 = vtanh.f32 %v419_v58  ;;  %v1616_v61 = vpop.f32.mrb[15].mxu0  ;;  %v2470_v58 = vld [vmem:[%s2603_s4] ss:$0 sm:$0xff] }
 0x3cf   :  { %v2314_v62 = vpop.eup %1947 }
 0x3d0   :  { %v423_v63 = vpack.c.bf16 %v2314_v62, %v2314_v62  ;;  %v612_v28 = vpack.c.bf16 %v2314_v62, %v2290_v54 }
 0x3d2   :  { %1634 = vmatmul.mubr.bf16.vlgmr.msra.gmra.mrb[8].mxu1 %v423_v63 }
 0x3d3   :  { %1658 = vmatpush3.bf16.msra.mxu1 %v2103_v1  ;;  %1673 = vmatprep.mubr.msk.bf16.mxu1 %vm2026_vm0, %v2025_v0 }
 0x3d4   :  { %1659 = vmatprep.subr.bf16.mxu1 %v2025_v0 }
 0x3d7   :  { %1660 = vmatpush3.bf16.msra.mxu1 %v2109_v2 }
 0x3d8   :  { %1661 = vmatprep.subr.bf16.mxu1 %v2025_v0 }
 0x3db   :  { %1662 = vmatpush3.bf16.msra.mxu1 %v2115_v3 }
 0x3dc   :  { %1663 = vmatprep.subr.bf16.mxu1 %v2025_v0 }
 0x3df   :  { %1664 = vmatpush3.bf16.msra.mxu1 %v2138_v10 }
 0x3e0   :  { %1665 = vmatprep.subr.bf16.mxu1 %v2025_v0 }
 0x3e3   :  { %1666 = vmatpush3.bf16.msra.mxu1 %v2146_v12 }
 0x3e4   :  { %1667 = vmatprep.subr.bf16.mxu1 %v2025_v0 }
 0x3e7   :  { %1668 = vmatpush3.bf16.msra.mxu1 %v2156_v13 }
 0x3e8   :  { %1669 = vmatprep.subr.bf16.mxu1 %v2025_v0 }
 0x3eb   :  { %1670 = vmatpush3.bf16.msra.mxu1 %v2165_v14 }
 0x3ec   :  { %1671 = vmatprep.subr.bf16.mxu1 %v2025_v0 }
 0x3ef   :  { %1672 = vmatpush3.bf16.msra.mxu1 %v2176_v15 }
 0x4a5   :  { %v458_v5 = vpop.f32.mrb[8].mxu1 }
 0x4a6   :  { %v464_v6 = vadd.f32 %v458_v5, %v155_v4  ;;  %v1635_v7 = vpop.f32.mrb[9].mxu1 }
 0x4a7   :  { %v461_v8 = vpop.f32.mrb[10].mxu1 }
 0x4a8   :  { %1949 = vtanh.f32 %v464_v6  ;;  %v1636_v9 = vpop.f32.mrb[11].mxu1 }
 0x4b2   :  { %v1950_v11 = vpop.eup %1949 }
 0x4b3   :  { %v468_v17 = vpack.c.bf16 %v1950_v11, %v1950_v11 }
 0x4b5   :  { %1654 = vmatmul.mubr.bf16.vlgmr.msra.gmra.mrb[16].mxu0 %v468_v17 }
 0x4b6   :  { %1678 = vmatpush3.bf16.msra.mxu0 %v2103_v1  ;;  %1693 = vmatprep.mubr.msk.bf16.mxu0 %vm2026_vm0, %v2025_v0  ;;  %v1917_v1 = vld [vmem:[#allocation5] sm:$0xff]  }
 0x4b7   :  { %1679 = vmatprep.subr.bf16.mxu0 %v2025_v0  ;;  %1697 = vmatprep.subr.bf16.mxu1 %v1917_v1 }
 0x4ba   :  { %1680 = vmatpush3.bf16.msra.mxu0 %v2109_v2  ;;  %v158_v2 = vadd.f32 %v2232_v27, %v2263_v39  ;;  %v2414_v39 = vld [vmem:[%s2604_s5 + $0x78] sm:$0xff]  }
 0x4bb   :  { %1681 = vmatprep.subr.bf16.mxu0 %v2025_v0 }
 0x4be   :  { %1682 = vmatpush3.bf16.msra.mxu0 %v2115_v3 }
 0x4bf   :  { %1683 = vmatprep.subr.bf16.mxu0 %v2025_v0 }
 0x4c2   :  { %1684 = vmatpush3.bf16.msra.mxu0 %v2138_v10 }
 0x4c3   :  { %1685 = vmatprep.subr.bf16.mxu0 %v2025_v0 }
 0x4c6   :  { %1686 = vmatpush3.bf16.msra.mxu0 %v2146_v12 }
 0x4c7   :  { %1687 = vmatprep.subr.bf16.mxu0 %v2025_v0 }
 0x4ca   :  { %1688 = vmatpush3.bf16.msra.mxu0 %v2156_v13 }
 0x4cb   :  { %1689 = vmatprep.subr.bf16.mxu0 %v2025_v0 }
 0x4ce   :  { %1690 = vmatpush3.bf16.msra.mxu0 %v2165_v14  ;;  %v1918_v14 = vld [vmem:[#allocation5 + $0x8] sm:$0xff]  }
 0x4cf   :  { %1691 = vmatprep.subr.bf16.mxu0 %v2025_v0 }
 0x4d2   :  { %1692 = vmatpush3.bf16.msra.mxu0 %v2176_v15  ;;  %v1919_v15 = vld [vmem:[#allocation5 + $0x10] sm:$0xff]  }
 0x4d3   :  { %1721 = vmatprep.subr.bf16.mxu0 %v2025_v0 }
 0x588   :  { %v503_v3 = vpop.f32.mrb[16].mxu0 }
 0x589   :  { %v509_v10 = vadd.f32 %v503_v3, %v158_v2  ;;  %v1655_v12 = vpop.f32.mrb[17].mxu0 }
 0x58a   :  { %v506_v18 = vpop.f32.mrb[18].mxu0 }
 0x58b   :  { %1951 = vtanh.f32 %v509_v10  ;;  %v1656_v13 = vpop.f32.mrb[19].mxu0 }
 0x595   :  { %v1952_v19 = vpop.eup %1951 }
 0x596   :  { %v513_v20 = vpack.c.bf16 %v1952_v19, %v1952_v19  ;;  %v613_v29 = vpack.c.bf16 %v1952_v19, %v1950_v11 }
 0x598   :  { %1674 = vmatmul.mubr.bf16.vlgmr.msra.gmra.mrb[12].mxu1 %v513_v20 }
 0x599   :  { %1698 = vmatpush3.bf16.msra.mxu1 %v1917_v1  ;;  %1713 = vmatprep.mubr.bf16.mxu1 %v611_v21 }
 0x59a   :  { %1699 = vmatprep.subr.bf16.mxu1 %v1918_v14 }
 0x59d   :  { %1700 = vmatpush3.bf16.msra.mxu1 %v1918_v14 }
 0x59e   :  { %1701 = vmatprep.subr.bf16.mxu1 %v1919_v15 }
 0x5a1   :  { %1702 = vmatpush3.bf16.msra.mxu1 %v1919_v15 }
 0x5a2   :  { %1703 = vmatprep.subr.bf16.mxu1 %v1920_v22 }
 0x5a5   :  { %1704 = vmatpush3.bf16.msra.mxu1 %v1920_v22 }
 0x5a6   :  { %1705 = vmatprep.subr.bf16.mxu1 %v1921_v23 }
 0x5a9   :  { %1706 = vmatpush3.bf16.msra.mxu1 %v1921_v23 }
 0x5aa   :  { %1707 = vmatprep.subr.bf16.mxu1 %v1922_v24 }
 0x5ad   :  { %1708 = vmatpush3.bf16.msra.mxu1 %v1922_v24 }
 0x5ae   :  { %1709 = vmatprep.subr.bf16.mxu1 %v1923_v25 }
 0x5b1   :  { %1710 = vmatpush3.bf16.msra.mxu1 %v1923_v25 }
 0x5b2   :  { %1711 = vmatprep.subr.bf16.mxu1 %v1924_v26 }
 0x5b5   :  { %1712 = vmatpush3.bf16.msra.mxu1 %v1924_v26 }
 0x5b6   :  { %1741 = vmatprep.subr.bf16.mxu1 %v2025_v0 }
 0x5b8   :  { %1714 = vmatmul.mubr.bf16.vlgmr.msra.gmra.mrb[16].mxu1 %v612_v28 }
 0x5b9   :  { %1717 = vmatprep.mubr.bf16.mxu1 %v613_v29  ;;  %1742 = vmatpush3.bf16.msra.mxu1 %v2365_v30 }
 0x5ba   :  { %1743 = vmatprep.subr.bf16.mxu1 %v2025_v0 }
 0x5bd   :  { %1744 = vmatpush3.bf16.msra.mxu1 %v2372_v31 }
 0x5be   :  { %1745 = vmatprep.subr.bf16.mxu1 %v2025_v0 }
 0x5c1   :  { %1746 = vmatpush3.bf16.msra.mxu1 %v2379_v32 }
 0x5c2   :  { %1747 = vmatprep.subr.bf16.mxu1 %v2025_v0 }
 0x5c5   :  { %1748 = vmatpush3.bf16.msra.mxu1 %v2386_v33 }
 0x5c6   :  { %1749 = vmatprep.subr.bf16.mxu1 %v2025_v0 }
 0x5c9   :  { %1750 = vmatpush3.bf16.msra.mxu1 %v2393_v34 }
 0x5ca   :  { %1751 = vmatprep.subr.bf16.mxu1 %v2025_v0 }
 0x5cd   :  { %1752 = vmatpush3.bf16.msra.mxu1 %v2400_v35 }
 0x5ce   :  { %1753 = vmatprep.subr.bf16.mxu1 %v2025_v0 }
 0x5d1   :  { %1754 = vmatpush3.bf16.msra.mxu1 %v2407_v37 }
 0x5d2   :  { %1755 = vmatprep.subr.bf16.mxu1 %v2025_v0 }
 0x5d5   :  { %1756 = vmatpush3.bf16.msra.mxu1 %v2414_v39 }
 0x5d6   :  { %1781 = vmatprep.subr.bf16.mxu1 %v2025_v0 }
 0x66b   :  { %v548_v41 = vpop.f32.mrb[12].mxu1 }
 0x66c   :  { %v554_v42 = vadd.f32 %v548_v41, %v163_v40  ;;  %v1675_v43 = vpop.f32.mrb[13].mxu1 }
 0x66d   :  { %v551_v44 = vpop.f32.mrb[14].mxu1 }
 0x66e   :  { %1953 = vtanh.f32 %v554_v42  ;;  %v1676_v45 = vpop.f32.mrb[15].mxu1 }
 0x678   :  { %v1954_v46 = vpop.eup %1953 }
 0x679   :  { %v558_v47 = vpack.c.bf16 %v1954_v46, %v1954_v46 }
 0x67b   :  { %1694 = vmatmul.mubr.bf16.vlgmr.msra.gmra.mrb[20].mxu0 %v558_v47 }
 0x67c   :  { %1722 = vmatpush3.bf16.msra.mxu0 %v2365_v30  ;;  %1737 = vmatprep.mubr.msk.bf16.mxu0 %vm2026_vm0, %v2025_v0 }
 0x67d   :  { %1723 = vmatprep.subr.bf16.mxu0 %v2025_v0 }
 0x680   :  { %1724 = vmatpush3.bf16.msra.mxu0 %v2372_v31 }
 0x681   :  { %1725 = vmatprep.subr.bf16.mxu0 %v2025_v0 }
 0x684   :  { %1726 = vmatpush3.bf16.msra.mxu0 %v2379_v32 }
 0x685   :  { %1727 = vmatprep.subr.bf16.mxu0 %v2025_v0 }
 0x688   :  { %1728 = vmatpush3.bf16.msra.mxu0 %v2386_v33 }
 0x689   :  { %1729 = vmatprep.subr.bf16.mxu0 %v2025_v0 }
 0x68b   :  { %v2430_v36 = vpop.f32.mrb[16].mxu1 }
 0x68c   :  { %v720_v48 = vpop.f32.mrb[17].mxu1  ;;  %1730 = vmatpush3.bf16.msra.mxu0 %v2393_v34  ;;  %v729_v18 = vadd.f32 %v2430_v36, %v2470_v58 }
 0x68d   :  { %v2433_v49 = vpop.f32.mrb[18].mxu1  ;;  %1731 = vmatprep.subr.bf16.mxu0 %v2025_v0  ;;  %v721_v59 = vadd.f32 %v2470_v58, %v720_v48 }
 0x68e   :  { %v2436_v50 = vpop.f32.mrb[19].mxu1  ;;  %v732_v23 = vadd.f32 %v2433_v49, %v2470_v58 }
 0x68f   :  { %v724_v9 = vadd.f32 %v2470_v58, %v2436_v50 }
 0x690   :  { %1732 = vmatpush3.bf16.msra.mxu0 %v2400_v35 }
 0x691   :  { %1733 = vmatprep.subr.bf16.mxu0 %v2025_v0 }
 0x694   :  { %1734 = vmatpush3.bf16.msra.mxu0 %v2407_v37 }
 0x695   :  { %1735 = vmatprep.subr.bf16.mxu0 %v2025_v0 }
 0x698   :  { %1736 = vmatpush3.bf16.msra.mxu0 %v2414_v39 }
 0x699   :  { %1761 = vmatprep.subr.bf16.mxu0 %v2025_v0 }
 0x69b   :  { %1738 = vmatmul.mubr.bf16.vlgmr.msra.gmra.mrb[24].mxu0 %v2027_v16  ;;  %v166_v16 = vadd.f32 %v2261_v38, %v2232_v27 }
 0x69c   :  { %1762 = vmatpush3.bf16.msra.mxu0 %v2365_v30  ;;  %1777 = vmatprep.mubr.msk.bf16.mxu0 %vm2026_vm0, %v2025_v0 }
 0x69d   :  { %1763 = vmatprep.subr.bf16.mxu0 %v2025_v0 }
 0x6a0   :  { %1764 = vmatpush3.bf16.msra.mxu0 %v2372_v31 }
 0x6a1   :  { %1765 = vmatprep.subr.bf16.mxu0 %v2025_v0 }
 0x6a4   :  { %1766 = vmatpush3.bf16.msra.mxu0 %v2379_v32 }
 0x6a5   :  { %1767 = vmatprep.subr.bf16.mxu0 %v2025_v0 }
 0x6a8   :  { %1768 = vmatpush3.bf16.msra.mxu0 %v2386_v33 }
 0x6a9   :  { %1769 = vmatprep.subr.bf16.mxu0 %v2025_v0 }
 0x6ac   :  { %1770 = vmatpush3.bf16.msra.mxu0 %v2393_v34 }
 0x6ad   :  { %1771 = vmatprep.subr.bf16.mxu0 %v2025_v0 }
 0x6b0   :  { %1772 = vmatpush3.bf16.msra.mxu0 %v2400_v35 }
 0x6b1   :  { %1773 = vmatprep.subr.bf16.mxu0 %v2025_v0 }
 0x6b4   :  { %1774 = vmatpush3.bf16.msra.mxu0 %v2407_v37 }
 0x6b5   :  { %1775 = vmatprep.subr.bf16.mxu0 %v2025_v0 }
 0x6b8   :  { %1776 = vmatpush3.bf16.msra.mxu0 %v2414_v39 }
 0x6b9   :  { %1801 = vmatprep.subr.bf16.mxu0 %v2025_v0 }
 0x74e   :  { %v593_v51 = vpop.f32.mrb[20].mxu0 }
 0x74f   :  { %v599_v52 = vadd.f32 %v593_v51, %v166_v16  ;;  %v1695_v53 = vpop.f32.mrb[21].mxu0  ;;  %v1936_v51 = vld [vmem:[#allocation7 + $0x18] sm:$0xff]  }
 0x750   :  { %v596_v54 = vpop.f32.mrb[22].mxu0 }
 0x751   :  { %1955 = vtanh.f32 %v599_v52  ;;  %v1696_v55 = vpop.f32.mrb[23].mxu0 }
 0x75b   :  { %v1956_v56 = vpop.eup %1955 }
 0x75c   :  { %v614_v57 = vpack.c.bf16 %v1956_v56, %v1954_v46 }
 0x75e   :  { %1718 = vmatmul.mubr.bf16.gmra.mrb[20].mxu1 %v614_v57 }
 0x75f   :  { %1757 = vmatprep.mubr.msk.bf16.mxu1 %vm2026_vm0, %v2025_v0 }
 0x76e   :  { %v862_v27 = vpop.f32.mrb[24].mxu0 }
 0x76f   :  { %v868_v38 = vadd.f32 %v862_v27, %v721_v59  ;;  %v1739_v60 = vpop.f32.mrb[25].mxu0 }
 0x770   :  { %v865_v61 = vpop.f32.mrb[26].mxu0  ;;  %v1938_v60 = vld [vmem:[#allocation7 + $0x28] sm:$0xff]  }
 0x771   :  { %1957 = vtanh.f32 %v868_v38  ;;  %v1740_v62 = vpop.f32.mrb[27].mxu0  ;;  %v1937_v38 = vld [vmem:[#allocation7 + $0x20] sm:$0xff]   ;;  %v1939_v61 = vld [vmem:[#allocation7 + $0x30] sm:$0xff]  }
 0x772   :  { %v1940_v62 = vld [vmem:[#allocation7 + $0x38] sm:$0xff]  }
 0x77b   :  { %v1958_v63 = vpop.eup %1957 }
 0x77c   :  { %v871_v4 = vpack.c.bf16 %v1958_v63, %v1958_v63 }
 0x77e   :  { %1758 = vmatmul.mubr.bf16.vlgmr.msra.gmra.mrb[24].mxu1 %v871_v4 }
 0x77f   :  { %1782 = vmatpush3.bf16.msra.mxu1 %v2365_v30  ;;  %1797 = vmatprep.mubr.msk.bf16.mxu1 %vm2026_vm0, %v2025_v0 }
 0x780   :  { %1783 = vmatprep.subr.bf16.mxu1 %v2025_v0 }
 0x783   :  { %1784 = vmatpush3.bf16.msra.mxu1 %v2372_v31 }
 0x784   :  { %1785 = vmatprep.subr.bf16.mxu1 %v2025_v0 }
 0x787   :  { %1786 = vmatpush3.bf16.msra.mxu1 %v2379_v32 }
 0x788   :  { %1787 = vmatprep.subr.bf16.mxu1 %v2025_v0 }
 0x78b   :  { %1788 = vmatpush3.bf16.msra.mxu1 %v2386_v33 }
 0x78c   :  { %1789 = vmatprep.subr.bf16.mxu1 %v2025_v0 }
 0x78f   :  { %1790 = vmatpush3.bf16.msra.mxu1 %v2393_v34 }
 0x790   :  { %1791 = vmatprep.subr.bf16.mxu1 %v2025_v0 }
 0x793   :  { %1792 = vmatpush3.bf16.msra.mxu1 %v2400_v35 }
 0x794   :  { %1793 = vmatprep.subr.bf16.mxu1 %v2025_v0 }
 0x797   :  { %1794 = vmatpush3.bf16.msra.mxu1 %v2407_v37 }
 0x798   :  { %1795 = vmatprep.subr.bf16.mxu1 %v2025_v0 }
 0x79b   :  { %1796 = vmatpush3.bf16.msra.mxu1 %v2414_v39 }
 0x79c   :  { %1821 = vmatprep.subr.bf16.mxu1 %v2025_v0 }
 0x831   :  { %v2491_v5 = vpop.f32.mrb[20].mxu1 }
 0x832   :  { %v2493_v6 = vpop.f32.mrb[21].mxu1  ;;  %v745_v52 = vadd.f32 %v2491_v5, %v2470_v58 }
 0x833   :  { %v2495_v7 = vpop.f32.mrb[22].mxu1  ;;  %v737_v42 = vadd.f32 %v2470_v58, %v2493_v6 }
 0x834   :  { %v2497_v8 = vpop.f32.mrb[23].mxu1  ;;  %v748_v63 = vadd.f32 %v2495_v7, %v2470_v58 }
 0x851   :  { %v906_v11 = vpop.f32.mrb[24].mxu1 }
 0x852   :  { %v912_v17 = vadd.f32 %v906_v11, %v724_v9  ;;  %v1759_v1 = vpop.f32.mrb[25].mxu1 }
 0x853   :  { %v909_v2 = vpop.f32.mrb[26].mxu1  ;;  %v1348_v1 = vld [vmem:[%s2606_s7] ss:$0 sm:$0xff] }
 0x854   :  { %1959 = vtanh.f32 %v912_v17  ;;  %v1760_v3 = vpop.f32.mrb[27].mxu1 }
 0x85e   :  { %v1960_v10 = vpop.eup %1959 }
 0x85f   :  { %v915_v12 = vpack.c.bf16 %v1960_v10, %v1960_v10 }
 0x861   :  { %1778 = vmatmul.mubr.bf16.vlgmr.msra.gmra.mrb[28].mxu0 %v915_v12 }
 0x862   :  { %1802 = vmatpush3.bf16.msra.mxu0 %v2365_v30  ;;  %1817 = vmatprep.mubr.msk.bf16.mxu0 %vm2026_vm0, %v2025_v0 }
 0x863   :  { %1803 = vmatprep.subr.bf16.mxu0 %v2025_v0 }
 0x866   :  { %1804 = vmatpush3.bf16.msra.mxu0 %v2372_v31 }
 0x867   :  { %1805 = vmatprep.subr.bf16.mxu0 %v2025_v0 }
 0x86a   :  { %1806 = vmatpush3.bf16.msra.mxu0 %v2379_v32 }
 0x86b   :  { %1807 = vmatprep.subr.bf16.mxu0 %v2025_v0 }
 0x86e   :  { %1808 = vmatpush3.bf16.msra.mxu0 %v2386_v33 }
 0x86f   :  { %1809 = vmatprep.subr.bf16.mxu0 %v2025_v0 }
 0x872   :  { %1810 = vmatpush3.bf16.msra.mxu0 %v2393_v34 }
 0x873   :  { %1811 = vmatprep.subr.bf16.mxu0 %v2025_v0 }
 0x876   :  { %1812 = vmatpush3.bf16.msra.mxu0 %v2400_v35 }
 0x877   :  { %1813 = vmatprep.subr.bf16.mxu0 %v2025_v0 }
 0x87a   :  { %1814 = vmatpush3.bf16.msra.mxu0 %v2407_v37 }
 0x87b   :  { %1815 = vmatprep.subr.bf16.mxu0 %v2025_v0 }
 0x87e   :  { %1816 = vmatpush3.bf16.msra.mxu0 %v2414_v39 }
 0x87f   :  { %1841 = vmatprep.subr.bf16.mxu0 %v2025_v0 }
 0x934   :  { %v950_v13 = vpop.f32.mrb[28].mxu0 }
 0x935   :  { %v956_v19 = vadd.f32 %v950_v13, %v729_v18  ;;  %v1779_v20 = vpop.f32.mrb[29].mxu0 }
 0x936   :  { %v953_v14 = vpop.f32.mrb[30].mxu0 }
 0x937   :  { %1961 = vtanh.f32 %v956_v19  ;;  %v1780_v21 = vpop.f32.mrb[31].mxu0 }
 0x941   :  { %v1962_v15 = vpop.eup %1961 }
 0x942   :  { %v959_v22 = vpack.c.bf16 %v1962_v15, %v1962_v15 }
 0x944   :  { %1798 = vmatmul.mubr.bf16.vlgmr.msra.gmra.mrb[28].mxu1 %v959_v22 }
 0x945   :  { %1822 = vmatpush3.bf16.msra.mxu1 %v2365_v30  ;;  %1837 = vmatprep.mubr.msk.bf16.mxu1 %vm2026_vm0, %v2025_v0 }
 0x946   :  { %1823 = vmatprep.subr.bf16.mxu1 %v2025_v0 }
 0x949   :  { %1824 = vmatpush3.bf16.msra.mxu1 %v2372_v31 }
 0x94a   :  { %1825 = vmatprep.subr.bf16.mxu1 %v2025_v0 }
 0x94d   :  { %1826 = vmatpush3.bf16.msra.mxu1 %v2379_v32 }
 0x94e   :  { %1827 = vmatprep.subr.bf16.mxu1 %v2025_v0 }
 0x951   :  { %1828 = vmatpush3.bf16.msra.mxu1 %v2386_v33 }
 0x952   :  { %1829 = vmatprep.subr.bf16.mxu1 %v2025_v0 }
 0x955   :  { %1830 = vmatpush3.bf16.msra.mxu1 %v2393_v34 }
 0x956   :  { %1831 = vmatprep.subr.bf16.mxu1 %v2025_v0 }
 0x959   :  { %1832 = vmatpush3.bf16.msra.mxu1 %v2400_v35 }
 0x95a   :  { %1833 = vmatprep.subr.bf16.mxu1 %v2025_v0 }
 0x95d   :  { %1834 = vmatpush3.bf16.msra.mxu1 %v2407_v37 }
 0x95e   :  { %1835 = vmatprep.subr.bf16.mxu1 %v2025_v0 }
 0x961   :  { %1836 = vmatpush3.bf16.msra.mxu1 %v2414_v39 }
 0x962   :  { %1861 = vmatprep.subr.bf16.mxu1 %v2025_v0 }
 0xa17   :  { %v994_v24 = vpop.f32.mrb[28].mxu1 }
 0xa18   :  { %v1000_v25 = vadd.f32 %v994_v24, %v732_v23  ;;  %v1799_v26 = vpop.f32.mrb[29].mxu1 }
 0xa19   :  { %v997_v28 = vpop.f32.mrb[30].mxu1 }
 0xa1a   :  { %1963 = vtanh.f32 %v1000_v25  ;;  %v1800_v29 = vpop.f32.mrb[31].mxu1 }
 0xa24   :  { %v1964_v40 = vpop.eup %1963 }
 0xa25   :  { %v1003_v41 = vpack.c.bf16 %v1964_v40, %v1964_v40 }
 0xa27   :  { %1818 = vmatmul.mubr.bf16.vlgmr.msra.gmra.mrb[32].mxu0 %v1003_v41 }
 0xa28   :  { %1842 = vmatpush3.bf16.msra.mxu0 %v2365_v30  ;;  %1857 = vmatprep.mubr.msk.bf16.mxu0 %vm2026_vm0, %v2025_v0 }
 0xa29   :  { %1843 = vmatprep.subr.bf16.mxu0 %v2025_v0 }
 0xa2c   :  { %1844 = vmatpush3.bf16.msra.mxu0 %v2372_v31 }
 0xa2d   :  { %1845 = vmatprep.subr.bf16.mxu0 %v2025_v0 }
 0xa30   :  { %1846 = vmatpush3.bf16.msra.mxu0 %v2379_v32 }
 0xa31   :  { %1847 = vmatprep.subr.bf16.mxu0 %v2025_v0 }
 0xa34   :  { %1848 = vmatpush3.bf16.msra.mxu0 %v2386_v33 }
 0xa35   :  { %1849 = vmatprep.subr.bf16.mxu0 %v2025_v0 }
 0xa38   :  { %1850 = vmatpush3.bf16.msra.mxu0 %v2393_v34 }
 0xa39   :  { %1851 = vmatprep.subr.bf16.mxu0 %v2025_v0 }
 0xa3c   :  { %1852 = vmatpush3.bf16.msra.mxu0 %v2400_v35 }
 0xa3d   :  { %1853 = vmatprep.subr.bf16.mxu0 %v2025_v0 }
 0xa40   :  { %1854 = vmatpush3.bf16.msra.mxu0 %v2407_v37 }
 0xa41   :  { %1855 = vmatprep.subr.bf16.mxu0 %v2025_v0 }
 0xa44   :  { %1856 = vmatpush3.bf16.msra.mxu0 %v2414_v39 }
 0xa45   :  { %1881 = vmatprep.subr.bf16.mxu0 %v2025_v0 }
 0xafa   :  { %v1038_v43 = vpop.f32.mrb[32].mxu0 }
 0xafb   :  { %v1044_v44 = vadd.f32 %v1038_v43, %v737_v42  ;;  %v1819_v45 = vpop.f32.mrb[33].mxu0 }
 0xafc   :  { %v1041_v46 = vpop.f32.mrb[34].mxu0 }
 0xafd   :  { %1965 = vtanh.f32 %v1044_v44  ;;  %v1820_v47 = vpop.f32.mrb[35].mxu0 }
 0xb07   :  { %v1966_v36 = vpop.eup %1965 }
 0xb08   :  { %v1047_v48 = vpack.c.bf16 %v1966_v36, %v1966_v36 }
 0xb0a   :  { %1838 = vmatmul.mubr.bf16.vlgmr.msra.gmra.mrb[32].mxu1 %v1047_v48 }
 0xb0b   :  { %1862 = vmatpush3.bf16.msra.mxu1 %v2365_v30  ;;  %1877 = vmatprep.mubr.msk.bf16.mxu1 %vm2026_vm0, %v2025_v0  ;;  %v740_v30 = vadd.f32 %v2470_v58, %v2497_v8 }
 0xb0c   :  { %1863 = vmatprep.subr.bf16.mxu1 %v2025_v0 }
 0xb0f   :  { %1864 = vmatpush3.bf16.msra.mxu1 %v2372_v31 }
 0xb10   :  { %1865 = vmatprep.subr.bf16.mxu1 %v2025_v0 }
 0xb13   :  { %1866 = vmatpush3.bf16.msra.mxu1 %v2379_v32 }
 0xb14   :  { %1867 = vmatprep.subr.bf16.mxu1 %v2025_v0 }
 0xb17   :  { %1868 = vmatpush3.bf16.msra.mxu1 %v2386_v33 }
 0xb18   :  { %1869 = vmatprep.subr.bf16.mxu1 %v2025_v0 }
 0xb1b   :  { %1870 = vmatpush3.bf16.msra.mxu1 %v2393_v34 }
 0xb1c   :  { %1871 = vmatprep.subr.bf16.mxu1 %v2025_v0 }
 0xb1f   :  { %1872 = vmatpush3.bf16.msra.mxu1 %v2400_v35  ;;  %v1933_v35 = vld [vmem:[#allocation7] sm:$0xff]  }
 0xb20   :  { %1873 = vmatprep.subr.bf16.mxu1 %v2025_v0 }
 0xb23   :  { %1874 = vmatpush3.bf16.msra.mxu1 %v2407_v37  ;;  %v1934_v37 = vld [vmem:[#allocation7 + $0x8] sm:$0xff]  }
 0xb24   :  { %1875 = vmatprep.subr.bf16.mxu1 %v2025_v0 }
 0xb27   :  { %1876 = vmatpush3.bf16.msra.mxu1 %v2414_v39  ;;  %v1935_v39 = vld [vmem:[#allocation7 + $0x10] sm:$0xff]  }
 0xbdd   :  { %v1082_v31 = vpop.f32.mrb[32].mxu1 }
 0xbde   :  { %v1088_v32 = vadd.f32 %v1082_v31, %v740_v30  ;;  %v1839_v33 = vpop.f32.mrb[33].mxu1 }
 0xbdf   :  { %v1085_v49 = vpop.f32.mrb[34].mxu1 }
 0xbe0   :  { %1967 = vtanh.f32 %v1088_v32  ;;  %v1840_v34 = vpop.f32.mrb[35].mxu1 }
 0xbea   :  { %v1968_v50 = vpop.eup %1967 }
 0xbeb   :  { %v1091_v16 = vpack.c.bf16 %v1968_v50, %v1968_v50 }
 0xbed   :  { %1858 = vmatmul.mubr.bf16.vlgmr.msra.gmra.mrb[36].mxu0 %v1091_v16 }
 0xbee   :  { %1897 = vmatprep.mubr.msk.bf16.mxu0 %vm2026_vm0, %v2025_v0  ;;  %1882 = vmatpush3.bf16.msra.mxu0 %v1933_v35 }
 0xbef   :  { %1883 = vmatprep.subr.bf16.mxu0 %v2025_v0 }
 0xbf2   :  { %1884 = vmatpush3.bf16.msra.mxu0 %v1934_v37 }
 0xbf3   :  { %1885 = vmatprep.subr.bf16.mxu0 %v2025_v0 }
 0xbf6   :  { %1886 = vmatpush3.bf16.msra.mxu0 %v1935_v39 }
 0xbf7   :  { %1887 = vmatprep.subr.bf16.mxu0 %v2025_v0 }
 0xbfa   :  { %1888 = vmatpush3.bf16.msra.mxu0 %v1936_v51 }
 0xbfb   :  { %1889 = vmatprep.subr.bf16.mxu0 %v2025_v0 }
 0xbfe   :  { %1890 = vmatpush3.bf16.msra.mxu0 %v1937_v38 }
 0xbff   :  { %1891 = vmatprep.subr.bf16.mxu0 %v2025_v0 }
 0xc02   :  { %1892 = vmatpush3.bf16.msra.mxu0 %v1938_v60 }
 0xc03   :  { %1893 = vmatprep.subr.bf16.mxu0 %v2025_v0 }
 0xc06   :  { %1894 = vmatpush3.bf16.msra.mxu0 %v1939_v61 }
 0xc07   :  { %1895 = vmatprep.subr.bf16.mxu0 %v2025_v0 }
 0xc0a   :  { %1896 = vmatpush3.bf16.msra.mxu0 %v1940_v62 }
 0xcc0   :  { %v1126_v53 = vpop.f32.mrb[36].mxu0 }
 0xcc1   :  { %v1132_v54 = vadd.f32 %v1126_v53, %v745_v52  ;;  %v1859_v55 = vpop.f32.mrb[37].mxu0 }
 0xcc2   :  { %v1129_v56 = vpop.f32.mrb[38].mxu0 }
 0xcc3   :  { %1969 = vtanh.f32 %v1132_v54  ;;  %v1860_v57 = vpop.f32.mrb[39].mxu0 }
 0xccd   :  { %v1970_v59 = vpop.eup %1969 }
 0xcce   :  { %v1135_v27 = vpack.c.bf16 %v1970_v59, %v1970_v59 }
 0xcd0   :  { %1878 = vmatmul.mubr.bf16.vlgmr.msra.gmra.mrb[36].mxu1 %v1135_v27 }
 0xda3   :  { %v1170_v4 = vpop.f32.mrb[36].mxu1 }
 0xda4   :  { %v1176_v5 = vadd.f32 %v1170_v4, %v748_v63  ;;  %v1879_v6 = vpop.f32.mrb[37].mxu1 }
 0xda5   :  { %v1173_v8 = vpop.f32.mrb[38].mxu1 }
 0xda6   :  { %1971 = vtanh.f32 %v1176_v5  ;;  %v1880_v9 = vpop.f32.mrb[39].mxu1 }
 0xdb0   :  { %v1972_v11 = vpop.eup %1971 }
 0xdb1   :  { %v1181_v17 = vpack.c.bf16 %v1972_v11, %v1972_v11 }
 0xdb3   :  { %1898 = vmatmul.mubr.bf16.vlgmr.msra.gmra.mrb[40].mxu0 %v1181_v17 }
 0xe86   :  { %v1287_v2 = vpop.f32.mrb[40].mxu0 }
 0xe87   :  { %v1288_v0 = vadd.f32 %v1348_v1, %v1287_v2  ;;  %v1899_v3 = vpop.f32.mrb[41].mxu0 }
 0xe88   :  { %v1290_v10 = vpop.f32.mrb[42].mxu0 }
 0xe89   :  { %1293 = vst [vmem:[%s2607_s8] sm:$0xff] %v1288_v0  ;;  %v1900_v58 = vpop.f32.mrb[43].mxu0 }
 0xe8a   :  { %1299 = vsyncpa [#allocation6], 1 }
 0xe8b   :  { %1300 = vsyncpa [#allocation8], 1 }

</bundles_post_ra>
